<compile_context>
chip_gen: v5e
topology: v5e:2x2
jax: 0.10.0
libtpu: 0.0.40
codegen_flags: <defaults>
</compile_context>

<pallas_src>
import math

import jax
import jax.numpy as jnp
from jax import lax
from jax.experimental import pallas as pl
from jax.experimental.pallas import tpu as pltpu

# ----- model hyper-parameters (small, consistent with the PyTorch module) -----
D_MODEL = 32
NHEAD = 4
HEAD_DIM = D_MODEL // NHEAD
DIM_FF = 64
L_TGT = 8       # target (query) sequence length
S_MEM = 8       # memory (encoder) sequence length
BATCH = 2
EPS = 1e-5
NEG_INF = -1e30

R_TGT = L_TGT * BATCH   # 16 flattened target rows  (row i -> batch i % BATCH)
R_MEM = S_MEM * BATCH   # 16 flattened memory rows

# ------------------------------ parameter slab ---------------------------------
SLAB_LANES = 128

_PARAM_SHAPES = (
    ("sa_w",   (D_MODEL, 3 * D_MODEL)),   # fused [Wq*scale | Wk | Wv]  (E, 3E)
    ("sa_b",   (1, 3 * D_MODEL)),
    ("sa_wo",  (D_MODEL, D_MODEL)),
    ("sa_bo",  (1, D_MODEL)),
    ("ln1_g",  (1, D_MODEL)),
    ("ln1_b",  (1, D_MODEL)),
    ("ca_w",   (D_MODEL, 3 * D_MODEL)),
    ("ca_b",   (1, 3 * D_MODEL)),
    ("ca_wo",  (D_MODEL, D_MODEL)),
    ("ca_bo",  (1, D_MODEL)),
    ("ln2_g",  (1, D_MODEL)),
    ("ln2_b",  (1, D_MODEL)),
    ("w1",     (D_MODEL, DIM_FF)),
    ("b1",     (1, DIM_FF)),
    ("w2",     (DIM_FF, D_MODEL)),
    ("b2",     (1, D_MODEL)),
    ("ln3_g",  (1, D_MODEL)),
    ("ln3_b",  (1, D_MODEL)),
    ("bias_self",  (NHEAD * R_TGT, NHEAD * R_TGT)),    # precomputed attn masks
    ("bias_cross", (NHEAD * R_TGT, NHEAD * R_MEM)),
)


def _make_layout():
    layout, row = {}, 0
    for name, (r, c) in _PARAM_SHAPES:
        assert c <= SLAB_LANES
        layout[name] = (row, r, c)
        row += ((r + 7) // 8) * 8      # every param starts on an 8-aligned row
    return layout, row


_LAYOUT, SLAB_ROWS = _make_layout()    # SLAB_ROWS = 448  (~229 KiB, one DMA)


# ------------------------------ kernel helpers --------------------------------
def _layer_norm(x, g, b):
    # x: (R, E); g/b: (1, E).  PyTorch LayerNorm: biased variance, eps=1e-5.
    mu = jnp.mean(x, axis=-1, keepdims=True)
    var = jnp.mean((x - mu) ** 2, axis=-1, keepdims=True)
    return (x - mu) * lax.rsqrt(var + EPS) * g + b


def _stack_heads(x):
    # (R, E) -> (NHEAD*R, HEAD_DIM); row h*R + i holds head h of token-row i.
    # Built from static lane slices + one sublane concat (no lane-split reshape).
    return jnp.concatenate(
        [x[:, h * HEAD_DIM:(h + 1) * HEAD_DIM] for h in range(NHEAD)], axis=0)


def _attention(q, k, v, w_out, b_out, bias):
    # Fused-heads attention: ONE scores matmul + ONE PV matmul for all heads and
    # all batch elements.  `bias` keeps only (same head AND same batch)
    # (query, key) pairs.  q: (Rq, E), k/v: (Rk, E); softmax scale is already
    # folded into the q projection.
    rq = q.shape[0]
    qs = _stack_heads(q)                                   # (H*Rq, dh)
    ks = _stack_heads(k)                                   # (H*Rk, dh)
    vs = _stack_heads(v)                                   # (H*Rk, dh)
    s = lax.dot_general(qs, ks, (((1,), (1,)), ((), ())),  # qs @ ks^T, no transpose
                        preferred_element_type=jnp.float32)
    s = s + bias
    s = s - jnp.max(s, axis=-1, keepdims=True)
    e = jnp.exp(s)
    p = e / jnp.sum(e, axis=-1, keepdims=True)             # exact division
    o = jnp.dot(p, vs, preferred_element_type=jnp.float32)  # (H*Rq, dh)
    attn = jnp.concatenate(                                  # un-stack heads
        [o[h * rq:(h + 1) * rq, :] for h in range(NHEAD)], axis=1)  # (Rq, E)
    return jnp.dot(attn, w_out, preferred_element_type=jnp.float32) + b_out


# --------------------------------- the kernel ---------------------------------
def decoder_layer_kernel(act_ref, prm_ref, out_ref):
    E = D_MODEL

    def prm(name):
        r0, r, c = _LAYOUT[name]
        return prm_ref[r0:r0 + r, 0:c]      # static slice of the slab: free view

    x = act_ref[0:R_TGT, :]                               # (16, E)
    qpos = act_ref[R_TGT:2 * R_TGT, :]
    mem = act_ref[2 * R_TGT:2 * R_TGT + R_MEM, :]
    pos = act_ref[2 * R_TGT + R_MEM:2 * R_TGT + 2 * R_MEM, :]

    # --- self attention: q,k from x+qpos, v from x -- ONE stacked projection ---
    sa_in = jnp.concatenate([x + qpos, x], axis=0)                       # (2R, E)
    proj = jnp.dot(sa_in, prm("sa_w"),
                   preferred_element_type=jnp.float32) + prm("sa_b")     # (2R, 3E)
    q = proj[0:R_TGT, 0:E]                    # from x+qpos (scale folded in)
    k = proj[0:R_TGT, E:2 * E]                # from x+qpos
    v = proj[R_TGT:2 * R_TGT, 2 * E:3 * E]    # from x
    sa = _attention(q, k, v, prm("sa_wo"), prm("sa_bo"), prm("bias_self"))
    x = _layer_norm(x + sa, prm("ln1_g"), prm("ln1_b"))

    # --- cross attention: q from x+qpos, k from mem+pos, v from mem ---
    ca_in = jnp.concatenate([x + qpos, mem + pos, mem], axis=0)          # (48, E)
    proj = jnp.dot(ca_in, prm("ca_w"),
                   preferred_element_type=jnp.float32) + prm("ca_b")     # (48, 3E)
    q = proj[0:R_TGT, 0:E]
    k = proj[R_TGT:R_TGT + R_MEM, E:2 * E]
    v = proj[R_TGT + R_MEM:R_TGT + 2 * R_MEM, 2 * E:3 * E]
    ca = _attention(q, k, v, prm("ca_wo"), prm("ca_bo"), prm("bias_cross"))
    x = _layer_norm(x + ca, prm("ln2_g"), prm("ln2_b"))

    # --- feed-forward ---
    h = jnp.maximum(jnp.dot(x, prm("w1"),
                            preferred_element_type=jnp.float32) + prm("b1"), 0.0)
    f = jnp.dot(h, prm("w2"),
                preferred_element_type=jnp.float32) + prm("b2")
    x = _layer_norm(x + f, prm("ln3_g"), prm("ln3_b"))

    out_ref[...] = x


# ------------------------------- host wrapper ----------------------------------
def transformer_decoder_layer(tgt, memory, pad_mask, pos, query_pos, param_slab):
    """tgt/query_pos: (L, N, E); memory/pos: (S, N, E).  Returns (L, N, E).
    pad_mask is accepted but unused (matches the PyTorch forward)."""
    del pad_mask
    L, N, E = tgt.shape
    S = memory.shape[0]

    # Pure reshapes (no transposes): rows ordered (seq, batch) -> batch = i % N.
    # The four tiny activation arrays are packed into ONE operand -> one DMA.
    acts = jnp.concatenate([
        tgt.reshape(L * N, E), query_pos.reshape(L * N, E),
        memory.reshape(S * N, E), pos.reshape(S * N, E)], axis=0)

    vmem = pl.BlockSpec(memory_space=pltpu.MemorySpace.VMEM)
    out_f = pl.pallas_call(
        decoder_layer_kernel,
        out_shape=jax.ShapeDtypeStruct((L * N, E), jnp.float32),
        in_specs=[vmem, vmem],
        out_specs=vmem,
        cost_estimate=pl.CostEstimate(flops=960_000, transcendentals=8_500,
                                      bytes_accessed=250_000),
    )(acts, param_slab)
    return out_f.reshape(L, N, E)


def _attn_bias(rows_q, rows_k):
    # Head-stacked layout: row h*R + i -> head h, flattened token-row i,
    # batch i % BATCH.  Keep only same-head AND same-batch (query, key) pairs.
    rq = jnp.arange(NHEAD * rows_q)[:, None]
    rk = jnp.arange(NHEAD * rows_k)[None, :]
    same_head = (rq // rows_q) == (rk // rows_k)
    same_batch = ((rq % rows_q) % BATCH) == ((rk % rows_k) % BATCH)
    return jnp.where(same_head & same_batch, 0.0, NEG_INF).astype(jnp.float32)


def prepare_params(p):
    """One-time host-side re-layout of PyTorch-convention weights into a single
    pre-padded f32 slab (one DMA): transpose to (in, out), split the packed QKV
    projection and re-fuse it as [Wq|Wk|Wv] for the row-stacked projection
    matmuls, fold the 1/sqrt(head_dim) softmax scale into Wq / bq, and append
    the precomputed static attention bias masks."""
    E = D_MODEL
    scale = 1.0 / math.sqrt(HEAD_DIM)

    def split(w, b):                       # w: (3E, E) rows = [q; k; v], b: (1, 3E)
        return (w[0:E], w[E:2 * E], w[2 * E:3 * E],
                b[:, 0:E], b[:, E:2 * E], b[:, 2 * E:3 * E])

    swq, swk, swv, sbq, sbk, sbv = split(p["sa_wi"], p["sa_bi"])
    cwq, cwk, cwv, cbq, cbk, cbv = split(p["ca_wi"], p["ca_bi"])

    vals = {
        "sa_w": jnp.concatenate([swq.T * scale, swk.T, swv.T], axis=1),   # (E, 3E)
        "sa_b": jnp.concatenate([sbq * scale, sbk, sbv], axis=1),         # (1, 3E)
        "sa_wo": p["sa_wo"].T, "sa_bo": p["sa_bo"],
        "ln1_g": p["ln1_g"], "ln1_b": p["ln1_b"],
        "ca_w": jnp.concatenate([cwq.T * scale, cwk.T, cwv.T], axis=1),
        "ca_b": jnp.concatenate([cbq * scale, cbk, cbv], axis=1),
        "ca_wo": p["ca_wo"].T, "ca_bo": p["ca_bo"],
        "ln2_g": p["ln2_g"], "ln2_b": p["ln2_b"],
        "w1": p["w1"].T, "b1": p["b1"],
        "w2": p["w2"].T, "b2": p["b2"],
        "ln3_g": p["ln3_g"], "ln3_b": p["ln3_b"],
        "bias_self": _attn_bias(R_TGT, R_TGT),
        "bias_cross": _attn_bias(R_TGT, R_MEM),
    }

    slab = jnp.zeros((SLAB_ROWS, SLAB_LANES), jnp.float32)
    for name, (rows, cols) in _PARAM_SHAPES:
        r0, _, _ = _LAYOUT[name]
        slab = slab.at[r0:r0 + rows, 0:cols].set(vals[name].astype(jnp.float32))
    return slab


# ---------------------------- pure-JAX reference ------------------------------
def _ref_mha(q_in, k_in, v_in, wi, bi, wo, bo, nhead):
    E = q_in.shape[-1]
    dh = E // nhead
    q = q_in @ wi[0:E].T + bi[0, 0:E]
    k = k_in @ wi[E:2 * E].T + bi[0, E:2 * E]
    v = v_in @ wi[2 * E:3 * E].T + bi[0, 2 * E:3 * E]

    def split(x):
        N, T, _ = x.shape
        return x.reshape(N, T, nhead, dh).transpose(0, 2, 1, 3)    # (N,H,T,dh)

    qh, kh, vh = split(q), split(k), split(v)
    s = jnp.einsum("nhqd,nhkd->nhqk", qh, kh) / math.sqrt(dh)
    p = jax.nn.softmax(s, axis=-1)
    o = jnp.einsum("nhqk,nhkd->nhqd", p, vh)
    N, H, T, _ = o.shape
    o = o.transpose(0, 2, 1, 3).reshape(N, T, E)
    return o @ wo.T + bo


def _ref_ln(x, g, b):
    mu = jnp.mean(x, axis=-1, keepdims=True)
    var = jnp.mean((x - mu) ** 2, axis=-1, keepdims=True)
    return (x - mu) / jnp.sqrt(var + EPS) * g + b


def reference_forward(tgt, memory, pos, query_pos, p):
    x = jnp.transpose(tgt, (1, 0, 2))
    mem = jnp.transpose(memory, (1, 0, 2))
    qp = jnp.transpose(query_pos, (1, 0, 2))
    po = jnp.transpose(pos, (1, 0, 2))
    sa = _ref_mha(x + qp, x + qp, x,
                  p["sa_wi"], p["sa_bi"], p["sa_wo"], p["sa_bo"], NHEAD)
    x = _ref_ln(x + sa, p["ln1_g"], p["ln1_b"])
    ca = _ref_mha(x + qp, mem + po, mem,
                  p["ca_wi"], p["ca_bi"], p["ca_wo"], p["ca_bo"], NHEAD)
    x = _ref_ln(x + ca, p["ln2_g"], p["ln2_b"])
    h = jnp.maximum(x @ p["w1"].T + p["b1"], 0.0)
    f = h @ p["w2"].T + p["b2"]
    x = _ref_ln(x + f, p["ln3_g"], p["ln3_b"])
    return jnp.transpose(x, (1, 0, 2))


# ------------------------------------------------------------------------------
def init_params(key):
    ks = jax.random.split(key, 12)
    E, F = D_MODEL, DIM_FF
    scale = 0.05
    return {
        "sa_wi": jax.random.normal(ks[0], (3 * E, E), jnp.float32) * scale,
        "sa_bi": jax.random.normal(ks[1], (1, 3 * E), jnp.float32) * scale,
        "sa_wo": jax.random.normal(ks[2], (E, E), jnp.float32) * scale,
        "sa_bo": jax.random.normal(ks[3], (1, E), jnp.float32) * scale,
        "ln1_g": jnp.ones((1, E), jnp.float32),
        "ln1_b": jnp.zeros((1, E), jnp.float32),
        "ca_wi": jax.random.normal(ks[4], (3 * E, E), jnp.float32) * scale,
        "ca_bi": jax.random.normal(ks[5], (1, 3 * E), jnp.float32) * scale,
        "ca_wo": jax.random.normal(ks[6], (E, E), jnp.float32) * scale,
        "ca_bo": jax.random.normal(ks[7], (1, E), jnp.float32) * scale,
        "ln2_g": jnp.ones((1, E), jnp.float32),
        "ln2_b": jnp.zeros((1, E), jnp.float32),
        "w1": jax.random.normal(ks[8], (F, E), jnp.float32) * scale,
        "b1": jax.random.normal(ks[9], (1, F), jnp.float32) * scale,
        "w2": jax.random.normal(ks[10], (E, F), jnp.float32) * scale,
        "b2": jax.random.normal(ks[11], (1, E), jnp.float32) * scale,
        "ln3_g": jnp.ones((1, E), jnp.float32),
        "ln3_b": jnp.zeros((1, E), jnp.float32),
    }


if __name__ == "__main__":
    key = jax.random.PRNGKey(0)
    k1, k2, k3, k4, kp = jax.random.split(key, 5)

    tgt = jax.random.normal(k1, (L_TGT, BATCH, D_MODEL), jnp.float32)
    memory = jax.random.normal(k2, (S_MEM, BATCH, D_MODEL), jnp.float32)
    pos = jax.random.normal(k3, (S_MEM, BATCH, D_MODEL), jnp.float32)
    query_pos = jax.random.normal(k4, (L_TGT, BATCH, D_MODEL), jnp.float32)
    pad_mask = jnp.zeros((BATCH, S_MEM), jnp.bool_)   # unused by forward()

    # The PyTorch forward() never consumes pad_mask; make that explicit here.
    assert not bool(jnp.any(pad_mask)), "non-trivial pad_mask is not implemented"

    torch_params = init_params(kp)            # PyTorch-convention weights
    param_slab = prepare_params(torch_params)  # one-time host-side slab packing

    fwd = jax.jit(transformer_decoder_layer)
    out = jax.block_until_ready(
        fwd(tgt, memory, pad_mask, pos, query_pos, param_slab))

    ref = reference_forward(tgt, memory, pos, query_pos, torch_params)
    assert out.shape == (L_TGT, BATCH, D_MODEL)
    max_err = jnp.max(jnp.abs(out - ref))
    assert jnp.allclose(out, ref, atol=5e-4, rtol=5e-4), \
        f"mismatch vs JAX reference (max abs err {max_err})"

    print("KERNEL_OK")
</pallas_src>

<mosaic_0001>
module attributes {stable_mosaic.version = 11 : i64} {
  func.func @decoder_layer_kernel(%arg0: memref<64x32xf32, #tpu.memory_space<vmem>>, %arg1: memref<448x128xf32, #tpu.memory_space<vmem>>, %arg2: memref<16x32xf32, #tpu.memory_space<vmem>>) attributes {dimension_semantics = [], scalar_prefetch = 0 : i64, scratch_operands = 0 : i64, tpu.core_type = #tpu.core_type<tc>} {
    %c0 = arith.constant 0 : index
    %c0_0 = arith.constant 0 : index
    %0 = vector.load %arg0[%c0, %c0_0] : memref<64x32xf32, #tpu.memory_space<vmem>>, vector<16x32xf32>
    %c16 = arith.constant 16 : index
    %c0_1 = arith.constant 0 : index
    %1 = vector.load %arg0[%c16, %c0_1] : memref<64x32xf32, #tpu.memory_space<vmem>>, vector<16x32xf32>
    %c32 = arith.constant 32 : index
    %c0_2 = arith.constant 0 : index
    %2 = vector.load %arg0[%c32, %c0_2] : memref<64x32xf32, #tpu.memory_space<vmem>>, vector<16x32xf32>
    %c48 = arith.constant 48 : index
    %c0_3 = arith.constant 0 : index
    %3 = vector.load %arg0[%c48, %c0_3] : memref<64x32xf32, #tpu.memory_space<vmem>>, vector<16x32xf32>
    %4 = arith.addf %0, %1 : vector<16x32xf32>
    %5 = tpu.concatenate %4, %0 in 0 : vector<16x32xf32>, vector<16x32xf32> -> vector<32x32xf32>
    %c0_4 = arith.constant 0 : index
    %c0_5 = arith.constant 0 : index
    %6 = vector.load %arg1[%c0_4, %c0_5] : memref<448x128xf32, #tpu.memory_space<vmem>>, vector<32x96xf32>
    %cst = arith.constant dense<0.000000e+00> : vector<32x96xf32>
    %7 = tpu.matmul %5, %6, %cst {dimension_numbers = #tpu.dot_dimension_numbers<[1], [0], [0], [1], [0, 0, 1, 1], [], []>} : vector<32x32xf32>, vector<32x96xf32>, vector<32x96xf32> -> vector<32x96xf32>
    %c32_6 = arith.constant 32 : index
    %c0_7 = arith.constant 0 : index
    %8 = vector.load %arg1[%c32_6, %c0_7] : memref<448x128xf32, #tpu.memory_space<vmem>>, vector<1x96xf32>
    %9 = vector.broadcast %8 : vector<1x96xf32> to vector<32x96xf32>
    %10 = arith.addf %7, %9 : vector<32x96xf32>
    %11 = vector.extract_strided_slice %10 {offsets = [0, 0], sizes = [16, 32], strides = [1, 1]} : vector<32x96xf32> to vector<16x32xf32>
    %12 = vector.extract_strided_slice %10 {offsets = [0, 32], sizes = [16, 32], strides = [1, 1]} : vector<32x96xf32> to vector<16x32xf32>
    %13 = vector.extract_strided_slice %10 {offsets = [16, 64], sizes = [16, 32], strides = [1, 1]} : vector<32x96xf32> to vector<16x32xf32>
    %c40 = arith.constant 40 : index
    %c0_8 = arith.constant 0 : index
    %14 = vector.load %arg1[%c40, %c0_8] : memref<448x128xf32, #tpu.memory_space<vmem>>, vector<32x32xf32>
    %c72 = arith.constant 72 : index
    %c0_9 = arith.constant 0 : index
    %15 = vector.load %arg1[%c72, %c0_9] : memref<448x128xf32, #tpu.memory_space<vmem>>, vector<1x32xf32>
    %c320 = arith.constant 320 : index
    %c0_10 = arith.constant 0 : index
    %16 = vector.load %arg1[%c320, %c0_10] : memref<448x128xf32, #tpu.memory_space<vmem>>, vector<64x64xf32>
    %17 = vector.extract_strided_slice %11 {offsets = [0, 0], sizes = [16, 8], strides = [1, 1]} : vector<16x32xf32> to vector<16x8xf32>
    %18 = vector.extract_strided_slice %11 {offsets = [0, 8], sizes = [16, 8], strides = [1, 1]} : vector<16x32xf32> to vector<16x8xf32>
    %19 = vector.extract_strided_slice %11 {offsets = [0, 16], sizes = [16, 8], strides = [1, 1]} : vector<16x32xf32> to vector<16x8xf32>
    %20 = vector.extract_strided_slice %11 {offsets = [0, 24], sizes = [16, 8], strides = [1, 1]} : vector<16x32xf32> to vector<16x8xf32>
    %21 = tpu.concatenate %17, %18, %19, %20 in 0 : vector<16x8xf32>, vector<16x8xf32>, vector<16x8xf32>, vector<16x8xf32> -> vector<64x8xf32>
    %22 = vector.extract_strided_slice %12 {offsets = [0, 0], sizes = [16, 8], strides = [1, 1]} : vector<16x32xf32> to vector<16x8xf32>
    %23 = vector.extract_strided_slice %12 {offsets = [0, 8], sizes = [16, 8], strides = [1, 1]} : vector<16x32xf32> to vector<16x8xf32>
    %24 = vector.extract_strided_slice %12 {offsets = [0, 16], sizes = [16, 8], strides = [1, 1]} : vector<16x32xf32> to vector<16x8xf32>
    %25 = vector.extract_strided_slice %12 {offsets = [0, 24], sizes = [16, 8], strides = [1, 1]} : vector<16x32xf32> to vector<16x8xf32>
    %26 = tpu.concatenate %22, %23, %24, %25 in 0 : vector<16x8xf32>, vector<16x8xf32>, vector<16x8xf32>, vector<16x8xf32> -> vector<64x8xf32>
    %27 = vector.extract_strided_slice %13 {offsets = [0, 0], sizes = [16, 8], strides = [1, 1]} : vector<16x32xf32> to vector<16x8xf32>
    %28 = vector.extract_strided_slice %13 {offsets = [0, 8], sizes = [16, 8], strides = [1, 1]} : vector<16x32xf32> to vector<16x8xf32>
    %29 = vector.extract_strided_slice %13 {offsets = [0, 16], sizes = [16, 8], strides = [1, 1]} : vector<16x32xf32> to vector<16x8xf32>
    %30 = vector.extract_strided_slice %13 {offsets = [0, 24], sizes = [16, 8], strides = [1, 1]} : vector<16x32xf32> to vector<16x8xf32>
    %31 = tpu.concatenate %27, %28, %29, %30 in 0 : vector<16x8xf32>, vector<16x8xf32>, vector<16x8xf32>, vector<16x8xf32> -> vector<64x8xf32>
    %cst_11 = arith.constant dense<0.000000e+00> : vector<64x64xf32>
    %32 = tpu.matmul %21, %26, %cst_11 {dimension_numbers = #tpu.dot_dimension_numbers<[1], [1], [0], [0], [0, 0, 1, 0], [], []>} : vector<64x8xf32>, vector<64x8xf32>, vector<64x64xf32> -> vector<64x64xf32>
    %33 = arith.addf %32, %16 : vector<64x64xf32>
    %cst_12 = arith.constant dense<0xFF800000> : vector<64xf32>
    %34 = vector.multi_reduction <maximumf>, %33, %cst_12 [1] : vector<64x64xf32> to vector<64xf32>
    %35 = vector.shape_cast %34 : vector<64xf32> to vector<64x1xf32>
    %36 = vector.broadcast %35 : vector<64x1xf32> to vector<64x64xf32>
    %37 = arith.subf %33, %36 : vector<64x64xf32>
    %38 = math.exp %37 : vector<64x64xf32>
    %cst_13 = arith.constant dense<0.000000e+00> : vector<64xf32>
    %39 = vector.multi_reduction <add>, %38, %cst_13 [1] : vector<64x64xf32> to vector<64xf32>
    %40 = vector.shape_cast %39 : vector<64xf32> to vector<64x1xf32>
    %41 = vector.broadcast %40 : vector<64x1xf32> to vector<64x64xf32>
    %42 = arith.divf %38, %41 : vector<64x64xf32>
    %cst_14 = arith.constant dense<0.000000e+00> : vector<64x8xf32>
    %43 = tpu.matmul %42, %31, %cst_14 {dimension_numbers = #tpu.dot_dimension_numbers<[1], [0], [0], [1], [0, 0, 1, 1], [], []>} : vector<64x64xf32>, vector<64x8xf32>, vector<64x8xf32> -> vector<64x8xf32>
    %44 = vector.extract_strided_slice %43 {offsets = [0, 0], sizes = [16, 8], strides = [1, 1]} : vector<64x8xf32> to vector<16x8xf32>
    %45 = vector.extract_strided_slice %43 {offsets = [16, 0], sizes = [16, 8], strides = [1, 1]} : vector<64x8xf32> to vector<16x8xf32>
    %46 = vector.extract_strided_slice %43 {offsets = [32, 0], sizes = [16, 8], strides = [1, 1]} : vector<64x8xf32> to vector<16x8xf32>
    %47 = vector.extract_strided_slice %43 {offsets = [48, 0], sizes = [16, 8], strides = [1, 1]} : vector<64x8xf32> to vector<16x8xf32>
    %48 = tpu.concatenate %44, %45, %46, %47 in 1 : vector<16x8xf32>, vector<16x8xf32>, vector<16x8xf32>, vector<16x8xf32> -> vector<16x32xf32>
    %cst_15 = arith.constant dense<0.000000e+00> : vector<16x32xf32>
    %49 = tpu.matmul %48, %14, %cst_15 {dimension_numbers = #tpu.dot_dimension_numbers<[1], [0], [0], [1], [0, 0, 1, 1], [], []>} : vector<16x32xf32>, vector<32x32xf32>, vector<16x32xf32> -> vector<16x32xf32>
    %50 = vector.broadcast %15 : vector<1x32xf32> to vector<16x32xf32>
    %51 = arith.addf %49, %50 : vector<16x32xf32>
    %52 = arith.addf %0, %51 : vector<16x32xf32>
    %c80 = arith.constant 80 : index
    %c0_16 = arith.constant 0 : index
    %53 = vector.load %arg1[%c80, %c0_16] : memref<448x128xf32, #tpu.memory_space<vmem>>, vector<1x32xf32>
    %c88 = arith.constant 88 : index
    %c0_17 = arith.constant 0 : index
    %54 = vector.load %arg1[%c88, %c0_17] : memref<448x128xf32, #tpu.memory_space<vmem>>, vector<1x32xf32>
    %cst_18 = arith.constant dense<0.000000e+00> : vector<16xf32>
    %55 = vector.multi_reduction <add>, %52, %cst_18 [1] : vector<16x32xf32> to vector<16xf32>
    %56 = vector.shape_cast %55 : vector<16xf32> to vector<16x1xf32>
    %cst_19 = arith.constant 3.200000e+01 : f32
    %57 = vector.broadcast %cst_19 : f32 to vector<16x1xf32>
    %58 = arith.divf %56, %57 : vector<16x1xf32>
    %59 = vector.broadcast %58 : vector<16x1xf32> to vector<16x32xf32>
    %60 = arith.subf %52, %59 : vector<16x32xf32>
    %61 = arith.mulf %60, %60 : vector<16x32xf32>
    %cst_20 = arith.constant dense<0.000000e+00> : vector<16xf32>
    %62 = vector.multi_reduction <add>, %61, %cst_20 [1] : vector<16x32xf32> to vector<16xf32>
    %63 = vector.shape_cast %62 : vector<16xf32> to vector<16x1xf32>
    %cst_21 = arith.constant 3.200000e+01 : f32
    %64 = vector.broadcast %cst_21 : f32 to vector<16x1xf32>
    %65 = arith.divf %63, %64 : vector<16x1xf32>
    %66 = vector.broadcast %58 : vector<16x1xf32> to vector<16x32xf32>
    %67 = arith.subf %52, %66 : vector<16x32xf32>
    %cst_22 = arith.constant 9.99999974E-6 : f32
    %68 = vector.broadcast %cst_22 : f32 to vector<16x1xf32>
    %69 = arith.addf %65, %68 : vector<16x1xf32>
    %70 = math.rsqrt %69 : vector<16x1xf32>
    %71 = vector.broadcast %70 : vector<16x1xf32> to vector<16x32xf32>
    %72 = arith.mulf %67, %71 : vector<16x32xf32>
    %73 = vector.broadcast %53 : vector<1x32xf32> to vector<16x32xf32>
    %74 = arith.mulf %72, %73 : vector<16x32xf32>
    %75 = vector.broadcast %54 : vector<1x32xf32> to vector<16x32xf32>
    %76 = arith.addf %74, %75 : vector<16x32xf32>
    %77 = arith.addf %76, %1 : vector<16x32xf32>
    %78 = arith.addf %2, %3 : vector<16x32xf32>
    %79 = tpu.concatenate %77, %78, %2 in 0 : vector<16x32xf32>, vector<16x32xf32>, vector<16x32xf32> -> vector<48x32xf32>
    %c96 = arith.constant 96 : index
    %c0_23 = arith.constant 0 : index
    %80 = vector.load %arg1[%c96, %c0_23] : memref<448x128xf32, #tpu.memory_space<vmem>>, vector<32x96xf32>
    %cst_24 = arith.constant dense<0.000000e+00> : vector<48x96xf32>
    %81 = tpu.matmul %79, %80, %cst_24 {dimension_numbers = #tpu.dot_dimension_numbers<[1], [0], [0], [1], [0, 0, 1, 1], [], []>} : vector<48x32xf32>, vector<32x96xf32>, vector<48x96xf32> -> vector<48x96xf32>
    %c128 = arith.constant 128 : index
    %c0_25 = arith.constant 0 : index
    %82 = vector.load %arg1[%c128, %c0_25] : memref<448x128xf32, #tpu.memory_space<vmem>>, vector<1x96xf32>
    %83 = vector.broadcast %82 : vector<1x96xf32> to vector<48x96xf32>
    %84 = arith.addf %81, %83 : vector<48x96xf32>
    %85 = vector.extract_strided_slice %84 {offsets = [0, 0], sizes = [16, 32], strides = [1, 1]} : vector<48x96xf32> to vector<16x32xf32>
    %86 = vector.extract_strided_slice %84 {offsets = [16, 32], sizes = [16, 32], strides = [1, 1]} : vector<48x96xf32> to vector<16x32xf32>
    %87 = vector.extract_strided_slice %84 {offsets = [32, 64], sizes = [16, 32], strides = [1, 1]} : vector<48x96xf32> to vector<16x32xf32>
    %c136 = arith.constant 136 : index
    %c0_26 = arith.constant 0 : index
    %88 = vector.load %arg1[%c136, %c0_26] : memref<448x128xf32, #tpu.memory_space<vmem>>, vector<32x32xf32>
    %c168 = arith.constant 168 : index
    %c0_27 = arith.constant 0 : index
    %89 = vector.load %arg1[%c168, %c0_27] : memref<448x128xf32, #tpu.memory_space<vmem>>, vector<1x32xf32>
    %c384 = arith.constant 384 : index
    %c0_28 = arith.constant 0 : index
    %90 = vector.load %arg1[%c384, %c0_28] : memref<448x128xf32, #tpu.memory_space<vmem>>, vector<64x64xf32>
    %91 = vector.extract_strided_slice %85 {offsets = [0, 0], sizes = [16, 8], strides = [1, 1]} : vector<16x32xf32> to vector<16x8xf32>
    %92 = vector.extract_strided_slice %85 {offsets = [0, 8], sizes = [16, 8], strides = [1, 1]} : vector<16x32xf32> to vector<16x8xf32>
    %93 = vector.extract_strided_slice %85 {offsets = [0, 16], sizes = [16, 8], strides = [1, 1]} : vector<16x32xf32> to vector<16x8xf32>
    %94 = vector.extract_strided_slice %85 {offsets = [0, 24], sizes = [16, 8], strides = [1, 1]} : vector<16x32xf32> to vector<16x8xf32>
    %95 = tpu.concatenate %91, %92, %93, %94 in 0 : vector<16x8xf32>, vector<16x8xf32>, vector<16x8xf32>, vector<16x8xf32> -> vector<64x8xf32>
    %96 = vector.extract_strided_slice %86 {offsets = [0, 0], sizes = [16, 8], strides = [1, 1]} : vector<16x32xf32> to vector<16x8xf32>
    %97 = vector.extract_strided_slice %86 {offsets = [0, 8], sizes = [16, 8], strides = [1, 1]} : vector<16x32xf32> to vector<16x8xf32>
    %98 = vector.extract_strided_slice %86 {offsets = [0, 16], sizes = [16, 8], strides = [1, 1]} : vector<16x32xf32> to vector<16x8xf32>
    %99 = vector.extract_strided_slice %86 {offsets = [0, 24], sizes = [16, 8], strides = [1, 1]} : vector<16x32xf32> to vector<16x8xf32>
    %100 = tpu.concatenate %96, %97, %98, %99 in 0 : vector<16x8xf32>, vector<16x8xf32>, vector<16x8xf32>, vector<16x8xf32> -> vector<64x8xf32>
    %101 = vector.extract_strided_slice %87 {offsets = [0, 0], sizes = [16, 8], strides = [1, 1]} : vector<16x32xf32> to vector<16x8xf32>
    %102 = vector.extract_strided_slice %87 {offsets = [0, 8], sizes = [16, 8], strides = [1, 1]} : vector<16x32xf32> to vector<16x8xf32>
    %103 = vector.extract_strided_slice %87 {offsets = [0, 16], sizes = [16, 8], strides = [1, 1]} : vector<16x32xf32> to vector<16x8xf32>
    %104 = vector.extract_strided_slice %87 {offsets = [0, 24], sizes = [16, 8], strides = [1, 1]} : vector<16x32xf32> to vector<16x8xf32>
    %105 = tpu.concatenate %101, %102, %103, %104 in 0 : vector<16x8xf32>, vector<16x8xf32>, vector<16x8xf32>, vector<16x8xf32> -> vector<64x8xf32>
    %cst_29 = arith.constant dense<0.000000e+00> : vector<64x64xf32>
    %106 = tpu.matmul %95, %100, %cst_29 {dimension_numbers = #tpu.dot_dimension_numbers<[1], [1], [0], [0], [0, 0, 1, 0], [], []>} : vector<64x8xf32>, vector<64x8xf32>, vector<64x64xf32> -> vector<64x64xf32>
    %107 = arith.addf %106, %90 : vector<64x64xf32>
    %cst_30 = arith.constant dense<0xFF800000> : vector<64xf32>
    %108 = vector.multi_reduction <maximumf>, %107, %cst_30 [1] : vector<64x64xf32> to vector<64xf32>
    %109 = vector.shape_cast %108 : vector<64xf32> to vector<64x1xf32>
    %110 = vector.broadcast %109 : vector<64x1xf32> to vector<64x64xf32>
    %111 = arith.subf %107, %110 : vector<64x64xf32>
    %112 = math.exp %111 : vector<64x64xf32>
    %cst_31 = arith.constant dense<0.000000e+00> : vector<64xf32>
    %113 = vector.multi_reduction <add>, %112, %cst_31 [1] : vector<64x64xf32> to vector<64xf32>
    %114 = vector.shape_cast %113 : vector<64xf32> to vector<64x1xf32>
    %115 = vector.broadcast %114 : vector<64x1xf32> to vector<64x64xf32>
    %116 = arith.divf %112, %115 : vector<64x64xf32>
    %cst_32 = arith.constant dense<0.000000e+00> : vector<64x8xf32>
    %117 = tpu.matmul %116, %105, %cst_32 {dimension_numbers = #tpu.dot_dimension_numbers<[1], [0], [0], [1], [0, 0, 1, 1], [], []>} : vector<64x64xf32>, vector<64x8xf32>, vector<64x8xf32> -> vector<64x8xf32>
    %118 = vector.extract_strided_slice %117 {offsets = [0, 0], sizes = [16, 8], strides = [1, 1]} : vector<64x8xf32> to vector<16x8xf32>
    %119 = vector.extract_strided_slice %117 {offsets = [16, 0], sizes = [16, 8], strides = [1, 1]} : vector<64x8xf32> to vector<16x8xf32>
    %120 = vector.extract_strided_slice %117 {offsets = [32, 0], sizes = [16, 8], strides = [1, 1]} : vector<64x8xf32> to vector<16x8xf32>
    %121 = vector.extract_strided_slice %117 {offsets = [48, 0], sizes = [16, 8], strides = [1, 1]} : vector<64x8xf32> to vector<16x8xf32>
    %122 = tpu.concatenate %118, %119, %120, %121 in 1 : vector<16x8xf32>, vector<16x8xf32>, vector<16x8xf32>, vector<16x8xf32> -> vector<16x32xf32>
    %cst_33 = arith.constant dense<0.000000e+00> : vector<16x32xf32>
    %123 = tpu.matmul %122, %88, %cst_33 {dimension_numbers = #tpu.dot_dimension_numbers<[1], [0], [0], [1], [0, 0, 1, 1], [], []>} : vector<16x32xf32>, vector<32x32xf32>, vector<16x32xf32> -> vector<16x32xf32>
    %124 = vector.broadcast %89 : vector<1x32xf32> to vector<16x32xf32>
    %125 = arith.addf %123, %124 : vector<16x32xf32>
    %126 = arith.addf %76, %125 : vector<16x32xf32>
    %c176 = arith.constant 176 : index
    %c0_34 = arith.constant 0 : index
    %127 = vector.load %arg1[%c176, %c0_34] : memref<448x128xf32, #tpu.memory_space<vmem>>, vector<1x32xf32>
    %c184 = arith.constant 184 : index
    %c0_35 = arith.constant 0 : index
    %128 = vector.load %arg1[%c184, %c0_35] : memref<448x128xf32, #tpu.memory_space<vmem>>, vector<1x32xf32>
    %cst_36 = arith.constant dense<0.000000e+00> : vector<16xf32>
    %129 = vector.multi_reduction <add>, %126, %cst_36 [1] : vector<16x32xf32> to vector<16xf32>
    %130 = vector.shape_cast %129 : vector<16xf32> to vector<16x1xf32>
    %cst_37 = arith.constant 3.200000e+01 : f32
    %131 = vector.broadcast %cst_37 : f32 to vector<16x1xf32>
    %132 = arith.divf %130, %131 : vector<16x1xf32>
    %133 = vector.broadcast %132 : vector<16x1xf32> to vector<16x32xf32>
    %134 = arith.subf %126, %133 : vector<16x32xf32>
    %135 = arith.mulf %134, %134 : vector<16x32xf32>
    %cst_38 = arith.constant dense<0.000000e+00> : vector<16xf32>
    %136 = vector.multi_reduction <add>, %135, %cst_38 [1] : vector<16x32xf32> to vector<16xf32>
    %137 = vector.shape_cast %136 : vector<16xf32> to vector<16x1xf32>
    %cst_39 = arith.constant 3.200000e+01 : f32
    %138 = vector.broadcast %cst_39 : f32 to vector<16x1xf32>
    %139 = arith.divf %137, %138 : vector<16x1xf32>
    %140 = vector.broadcast %132 : vector<16x1xf32> to vector<16x32xf32>
    %141 = arith.subf %126, %140 : vector<16x32xf32>
    %cst_40 = arith.constant 9.99999974E-6 : f32
    %142 = vector.broadcast %cst_40 : f32 to vector<16x1xf32>
    %143 = arith.addf %139, %142 : vector<16x1xf32>
    %144 = math.rsqrt %143 : vector<16x1xf32>
    %145 = vector.broadcast %144 : vector<16x1xf32> to vector<16x32xf32>
    %146 = arith.mulf %141, %145 : vector<16x32xf32>
    %147 = vector.broadcast %127 : vector<1x32xf32> to vector<16x32xf32>
    %148 = arith.mulf %146, %147 : vector<16x32xf32>
    %149 = vector.broadcast %128 : vector<1x32xf32> to vector<16x32xf32>
    %150 = arith.addf %148, %149 : vector<16x32xf32>
    %c192 = arith.constant 192 : index
    %c0_41 = arith.constant 0 : index
    %151 = vector.load %arg1[%c192, %c0_41] : memref<448x128xf32, #tpu.memory_space<vmem>>, vector<32x64xf32>
    %cst_42 = arith.constant dense<0.000000e+00> : vector<16x64xf32>
    %152 = tpu.matmul %150, %151, %cst_42 {dimension_numbers = #tpu.dot_dimension_numbers<[1], [0], [0], [1], [0, 0, 1, 1], [], []>} : vector<16x32xf32>, vector<32x64xf32>, vector<16x64xf32> -> vector<16x64xf32>
    %c224 = arith.constant 224 : index
    %c0_43 = arith.constant 0 : index
    %153 = vector.load %arg1[%c224, %c0_43] : memref<448x128xf32, #tpu.memory_space<vmem>>, vector<1x64xf32>
    %154 = vector.broadcast %153 : vector<1x64xf32> to vector<16x64xf32>
    %155 = arith.addf %152, %154 : vector<16x64xf32>
    %cst_44 = arith.constant 0.000000e+00 : f32
    %156 = vector.broadcast %cst_44 : f32 to vector<16x64xf32>
    %157 = arith.maximumf %155, %156 : vector<16x64xf32>
    %c232 = arith.constant 232 : index
    %c0_45 = arith.constant 0 : index
    %158 = vector.load %arg1[%c232, %c0_45] : memref<448x128xf32, #tpu.memory_space<vmem>>, vector<64x32xf32>
    %cst_46 = arith.constant dense<0.000000e+00> : vector<16x32xf32>
    %159 = tpu.matmul %157, %158, %cst_46 {dimension_numbers = #tpu.dot_dimension_numbers<[1], [0], [0], [1], [0, 0, 1, 1], [], []>} : vector<16x64xf32>, vector<64x32xf32>, vector<16x32xf32> -> vector<16x32xf32>
    %c296 = arith.constant 296 : index
    %c0_47 = arith.constant 0 : index
    %160 = vector.load %arg1[%c296, %c0_47] : memref<448x128xf32, #tpu.memory_space<vmem>>, vector<1x32xf32>
    %161 = vector.broadcast %160 : vector<1x32xf32> to vector<16x32xf32>
    %162 = arith.addf %159, %161 : vector<16x32xf32>
    %163 = arith.addf %150, %162 : vector<16x32xf32>
    %c304 = arith.constant 304 : index
    %c0_48 = arith.constant 0 : index
    %164 = vector.load %arg1[%c304, %c0_48] : memref<448x128xf32, #tpu.memory_space<vmem>>, vector<1x32xf32>
    %c312 = arith.constant 312 : index
    %c0_49 = arith.constant 0 : index
    %165 = vector.load %arg1[%c312, %c0_49] : memref<448x128xf32, #tpu.memory_space<vmem>>, vector<1x32xf32>
    %cst_50 = arith.constant dense<0.000000e+00> : vector<16xf32>
    %166 = vector.multi_reduction <add>, %163, %cst_50 [1] : vector<16x32xf32> to vector<16xf32>
    %167 = vector.shape_cast %166 : vector<16xf32> to vector<16x1xf32>
    %cst_51 = arith.constant 3.200000e+01 : f32
    %168 = vector.broadcast %cst_51 : f32 to vector<16x1xf32>
    %169 = arith.divf %167, %168 : vector<16x1xf32>
    %170 = vector.broadcast %169 : vector<16x1xf32> to vector<16x32xf32>
    %171 = arith.subf %163, %170 : vector<16x32xf32>
    %172 = arith.mulf %171, %171 : vector<16x32xf32>
    %cst_52 = arith.constant dense<0.000000e+00> : vector<16xf32>
    %173 = vector.multi_reduction <add>, %172, %cst_52 [1] : vector<16x32xf32> to vector<16xf32>
    %174 = vector.shape_cast %173 : vector<16xf32> to vector<16x1xf32>
    %cst_53 = arith.constant 3.200000e+01 : f32
    %175 = vector.broadcast %cst_53 : f32 to vector<16x1xf32>
    %176 = arith.divf %174, %175 : vector<16x1xf32>
    %177 = vector.broadcast %169 : vector<16x1xf32> to vector<16x32xf32>
    %178 = arith.subf %163, %177 : vector<16x32xf32>
    %cst_54 = arith.constant 9.99999974E-6 : f32
    %179 = vector.broadcast %cst_54 : f32 to vector<16x1xf32>
    %180 = arith.addf %176, %179 : vector<16x1xf32>
    %181 = math.rsqrt %180 : vector<16x1xf32>
    %182 = vector.broadcast %181 : vector<16x1xf32> to vector<16x32xf32>
    %183 = arith.mulf %178, %182 : vector<16x32xf32>
    %184 = vector.broadcast %164 : vector<1x32xf32> to vector<16x32xf32>
    %185 = arith.mulf %183, %184 : vector<16x32xf32>
    %186 = vector.broadcast %165 : vector<1x32xf32> to vector<16x32xf32>
    %187 = arith.addf %185, %186 : vector<16x32xf32>
    %c0_55 = arith.constant 0 : index
    %c0_56 = arith.constant 0 : index
    %188 = vector.load %arg2[%c0_55, %c0_56] : memref<16x32xf32, #tpu.memory_space<vmem>>, vector<16x32xf32>
    tpu.vector_store %arg2[%c0_55, %c0_56], %187 {strides = array<i32>} : memref<16x32xf32, #tpu.memory_space<vmem>>, vector<16x32xf32>,
    return
  }
}

</mosaic_0001>

<bundles_post_ra>
// kernel: transformer_decoder_layer.1
= control target key start
LH: loop header
LB: loop body
LE: loop exit
PB: predicated region body
PF: predicated region fallthrough
CT: control target
= control target key end

     0   :  { %7 = vsyncpa [#allocation3], 0  ;;  %s2072_s0 = inlined_call_operand.vmem [shape: f32[64,32], index: 0, kind: input, shape index: {}]   ;;  %s2073_s1 = inlined_call_operand.hbm [shape: f32[448,128], index: 1, kind: input, shape index: {}]   ;;  %s2074_s2 = inlined_call_operand.hbm [shape: f32[16,32], index: 2, kind: output, shape index: {}]  }
   0x1   :  { %8 = vsyncpa [#allocation4], 0  ;;  %s15_s11 = sshll.u32 %s2073_s1, 4  ;;  %s1673_s12 = smov [#allocation2]   ;;  %s16_s11 = int_to_ptr.hbm [resolvable:$true] %s15_s11 }
   0x2   :  { %s17_s13 = sshll.u32 %s1673_s12, 4  ;;  %s1674_s14 = smov 128   ;;  %s18_s13 = int_to_ptr.vmem [resolvable:$true] %s17_s13 }
   0x3   :  { %s1675_s15 = smov 8  }
   0x4   :  { %23 = dma.hbm_to_vmem [thread:$0]  %s16_s11, 7168, %s18_s13, [#allocation3], %s1674_s14, %s1674_s14, %s1675_s15  }
   0x5   :  { %1669 = dma.done.wait [#allocation3], 7168  }
   0x6   :  { %1670 = vsyncadd [#allocation3], 4294960128  ;;  %v41_v0 = vld [vmem:[#allocation2 + $0x18] sm:$0xff]  ;;  %v40_v1 = vld [vmem:[#allocation2 + $0x10] sm:$0xff]  ;;  %vm44_vm0 = vcmask 261120   ;;  %s1676_s23 = smov 120  }
   0x7   :  { %69 = vmatpush.msra.mxu0 %v41_v0  ;;  %v1709_v2 = vld [vmem:[%s2072_s0] sm:$0xff]  ;;  %v1714_v3 = vld [vmem:[%s2072_s0 + $0x10] sm:$0xff]  ;;  %v39_v4 = vld [vmem:[#allocation2 + $0x8] sm:$0xff]  ;;  %s1677_s24 = smov 112   ;;  %s1678_s25 = smov 104   ;;  %vm143_vm1 = vcmask 64512  }
   0x8   :  { %v38_v5 = vld [vmem:[#allocation2] sm:$0xff]  ;;  %v36_v6 = vadd.f32 %v1714_v3, %v1709_v2  ;;  %v1722_v7 = vld [vmem:[%s2072_s0 + $0x8] sm:$0xff]  ;;  %v1727_v8 = vld [vmem:[%s2072_s0 + $0x18] sm:$0xff]  ;;  %s1679_s26 = smov 96   ;;  %vm217_vm2 = vcmask 523264   ;;  %s1680_s27 = smov 64  }
   0x9   :  { %70 = vmatpush.msra.mxu0 %v40_v1  ;;  %v37_v9 = vadd.f32 %v1727_v8, %v1722_v7  ;;  %v1531_v11 = vld [vmem:[#allocation2 + $0x20] ss:$0 sm:$0xff]  ;;  %v92_v38 = vld [vmem:[#allocation2 + $0x148] sm:$0xff]  ;;  %v93_v42 = vld [vmem:[#allocation2 + $0x150] sm:$0xff]  ;;  %s1681_s28 = smov 16   ;;  %s1682_s29 = smov 24  }
   0xa   :  { %v91_v34 = vld [vmem:[#allocation2 + $0x140] sm:$0xff]  ;;  %v94_v46 = vld [vmem:[#allocation2 + $0x158] sm:$0xff]  ;;  %v96_v54 = vld [vmem:[#allocation2 + $0x168] sm:$0xff]  ;;  %s1362_s13 = sshll.u32 %s2074_s2, 4  ;;  %s1363_s13 = int_to_ptr.hbm [resolvable:$true] %s1362_s13 }
   0xb   :  { %71 = vmatpush.msra.mxu0 %v39_v4  ;;  %v95_v50 = vld [vmem:[#allocation2 + $0x160] sm:$0xff]  ;;  %v97_v58 = vld [vmem:[#allocation2 + $0x170] sm:$0xff]  ;;  %v98_v62 = vld [vmem:[#allocation2 + $0x178] sm:$0xff] }
   0xd   :  { %72 = vmatpush.msra.mxu0 %v38_v5 }
   0xe   :  { %1375 = vmatmul.msk.f32.vlgmr.msra.gmra.mxu0 %vm44_vm0, %v36_v6 }
  0x16   :  { %1376 = vmatmul.msk.f32.gmra.mxu0 %vm44_vm0, %v37_v9 }
  0x1e   :  { %1377 = vmatmul.msk.f32.gmra.mxu0 %vm44_vm0, %v1709_v2 }
  0x26   :  { %1378 = vmatmul.msk.f32.gmra.mxu0 %vm44_vm0, %v1722_v7 }
  0x8b   :  { %v74_v10 = vpop.f32.mrf.mxu0 }
  0x8c   :  { %v75_v14 = vadd.f32 %v1531_v11, %v74_v10 }
  0x93   :  { %v77_v12 = vpop.f32.mrf.mxu0 }
  0x94   :  { %v78_v13 = vadd.f32 %v1531_v11, %v77_v12 }
  0x96   :  { %103 = vrot.lane.b32.xlu2 %v78_v13, %s1676_s23  ;;  %107 = vrot.lane.b32.xlu1 %v78_v13, %s1677_s24 }
  0x97   :  { %111 = vrot.lane.b32.xlu0 %v78_v13, %s1678_s25 }
  0x9b   :  { %v80_v29 = vpop.f32.mrf.mxu0 }
  0x9c   :  { %v81_v30 = vadd.f32 %v1531_v11, %v80_v29 }
  0x9e   :  { %101 = vrot.lane.b32.xlu2 %v75_v14, %s1676_s23  ;;  %105 = vrot.lane.b32.xlu1 %v75_v14, %s1677_s24 }
  0x9f   :  { %109 = vrot.lane.b32.xlu0 %v75_v14, %s1678_s25 }
  0xa3   :  { %v83_v31 = vpop.f32.mrf.mxu0 }
  0xa4   :  { %v84_v32 = vadd.f32 %v1531_v11, %v83_v31 }
  0xa6   :  { %v1763_v33 = vpack.i.bf16 %v81_v30, %v84_v32 }
  0xf0   :  { %v104_v15 = vpop.permute.xlu2 %103 }
  0xf8   :  { %v102_v18 = vpop.permute.xlu2 %101 }
 0x108   :  { %v108_v16 = vpop.permute.xlu1 %107 }
 0x109   :  { %v112_v17 = vpop.permute.xlu0 %111  ;;  %137 = vrot.lane.b32.xlu2 %v108_v16, %s1679_s26 }
 0x10a   :  { %141 = vrot.lane.b32.xlu0 %v112_v17, %s1679_s26 }
 0x110   :  { %v106_v19 = vpop.permute.xlu1 %105 }
 0x111   :  { %v110_v20 = vpop.permute.xlu0 %109  ;;  %131 = vrot.lane.b32.xlu2 %v102_v18, %s1679_s26 }
 0x112   :  { %135 = vrot.lane.b32.xlu0 %v106_v19, %s1679_s26  ;;  %139 = vrot.lane.b32.xlu1 %v110_v20, %s1679_s26 }
 0x119   :  { %1462 = vrot.lane.b32.xlu2 %v1763_v33, %s1678_s25 }
 0x11a   :  { %129 = vrot.lane.b32.xlu0 %v78_v13, %s1679_s26  ;;  %133 = vrot.lane.b32.xlu1 %v104_v15, %s1679_s26 }
 0x122   :  { %127 = vrot.lane.b32.xlu1 %v75_v14, %s1679_s26  ;;  %1467 = vrot.lane.b32.xlu0 %v1763_v33, %s1677_s24 }
 0x12a   :  { %1472 = vrot.lane.b32.xlu1 %v1763_v33, %s1676_s23 }
 0x163   :  { %v138_v23 = vpop.permute.xlu2 %137 }
 0x16b   :  { %v132_v26 = vpop.permute.xlu2 %131 }
 0x173   :  { %v1463_v6 = vpop.permute.xlu2 %1462 }
 0x17c   :  { %v142_v21 = vpop.permute.xlu0 %141 }
 0x17d   :  { %1379 = vmatpush.xpose.msk.msra.mxu1 %vm143_vm1, %v142_v21 }
 0x184   :  { %v140_v22 = vpop.permute.xlu1 %139  ;;  %v136_v24 = vpop.permute.xlu0 %135 }
 0x185   :  { %1380 = vmatpush.xpose.msk.msra.mxu1 %vm143_vm1, %v140_v22 }
 0x189   :  { %1381 = vmatpush.xpose.msk.msra.mxu1 %vm143_vm1, %v138_v23 }
 0x18c   :  { %v134_v25 = vpop.permute.xlu1 %133  ;;  %v130_v27 = vpop.permute.xlu0 %129 }
 0x18d   :  { %1382 = vmatpush.xpose.msk.msra.mxu1 %vm143_vm1, %v136_v24 }
 0x191   :  { %1383 = vmatpush.xpose.msk.msra.mxu1 %vm143_vm1, %v134_v25 }
 0x194   :  { %v128_v28 = vpop.permute.xlu1 %127  ;;  %v1468_v4 = vpop.permute.xlu0 %1467 }
 0x195   :  { %1384 = vmatpush.xpose.msk.msra.mxu1 %vm143_vm1, %v132_v26 }
 0x199   :  { %1385 = vmatpush.xpose.msk.msra.mxu1 %vm143_vm1, %v130_v27 }
 0x19c   :  { %v1473_v5 = vpop.permute.xlu1 %1472 }
 0x19d   :  { %1386 = vmatpush.xpose.msk.msra.mxu1 %vm143_vm1, %v128_v28 }
 0x1a0   :  { %1387 = vmatmul.msk.f32.vlgmr.msra.gmra.mxu1 %vm143_vm1, %v75_v14 }
 0x1a8   :  { %1388 = vmatmul.msk.f32.gmra.mxu1 %vm143_vm1, %v78_v13 }
 0x1b0   :  { %1389 = vmatmul.msk.f32.gmra.mxu1 %vm143_vm1, %v102_v18 }
 0x1b8   :  { %1390 = vmatmul.msk.f32.gmra.mxu1 %vm143_vm1, %v104_v15 }
 0x1c0   :  { %1391 = vmatmul.msk.f32.gmra.mxu1 %vm143_vm1, %v106_v19 }
 0x1c8   :  { %1392 = vmatmul.msk.f32.gmra.mxu1 %vm143_vm1, %v108_v16 }
 0x1d0   :  { %1393 = vmatmul.msk.f32.gmra.mxu1 %vm143_vm1, %v110_v20 }
 0x1d8   :  { %1394 = vmatmul.msk.f32.gmra.mxu1 %vm143_vm1, %v112_v17 }
 0x21d   :  { %v193_v35 = vpop.f32.mrf.mxu1 }
 0x21e   :  { %v194_v36 = vadd.f32 %v193_v35, %v91_v34 }
 0x220   :  { %v218_v37 = vsel %vm217_vm2, %v194_v36, -inf }
 0x221   :  { %219 = vmax.xlane.f32.xlu2 %v218_v37 }
 0x225   :  { %v196_v39 = vpop.f32.mrf.mxu1 }
 0x226   :  { %v197_v40 = vadd.f32 %v196_v39, %v92_v38 }
 0x228   :  { %v221_v41 = vsel %vm217_vm2, %v197_v40, -inf }
 0x229   :  { %222 = vmax.xlane.f32.xlu0 %v221_v41 }
 0x22d   :  { %v199_v43 = vpop.f32.mrf.mxu1 }
 0x22e   :  { %v1776_v44 = vadd.f32 %v199_v43, %v93_v42 }
 0x230   :  { %v224_v45 = vsel %vm217_vm2, %v1776_v44, -inf }
 0x231   :  { %225 = vmax.xlane.f32.xlu1 %v224_v45 }
 0x235   :  { %v202_v47 = vpop.f32.mrf.mxu1 }
 0x236   :  { %v203_v48 = vadd.f32 %v202_v47, %v94_v46 }
 0x238   :  { %v227_v49 = vsel %vm217_vm2, %v203_v48, -inf }
 0x239   :  { %228 = vmax.xlane.f32.xlu1 %v227_v49 }
 0x23d   :  { %v205_v51 = vpop.f32.mrf.mxu1 }
 0x23e   :  { %v206_v52 = vadd.f32 %v205_v51, %v95_v50 }
 0x240   :  { %v230_v53 = vsel %vm217_vm2, %v206_v52, -inf }
 0x241   :  { %231 = vmax.xlane.f32.xlu2 %v230_v53 }
 0x245   :  { %v208_v55 = vpop.f32.mrf.mxu1 }
 0x246   :  { %v209_v56 = vadd.f32 %v208_v55, %v96_v54 }
 0x248   :  { %v233_v57 = vsel %vm217_vm2, %v209_v56, -inf }
 0x249   :  { %234 = vmax.xlane.f32.xlu0 %v233_v57 }
 0x24d   :  { %v211_v59 = vpop.f32.mrf.mxu1 }
 0x24e   :  { %v212_v60 = vadd.f32 %v211_v59, %v97_v58 }
 0x250   :  { %v236_v61 = vsel %vm217_vm2, %v212_v60, -inf }
 0x251   :  { %237 = vmax.xlane.f32.xlu1 %v236_v61 }
 0x255   :  { %v214_v63 = vpop.f32.mrf.mxu1 }
 0x256   :  { %v215_v0 = vadd.f32 %v214_v63, %v98_v62 }
 0x258   :  { %v239_v1 = vsel %vm217_vm2, %v215_v0, -inf }
 0x259   :  { %240 = vmax.xlane.f32.xlu0 %v239_v1 }
 0x26a   :  { %1482 = vrot.lane.b32.xlu1 %v1468_v4, %s1680_s27 }
 0x26d   :  { %1487 = vrot.lane.b32.xlu0 %v1473_v5, %s1680_s27 }
 0x294   :  { %v220_v9 = vpop.xlane.xlu2 %219 }
 0x295   :  { %v242_v10 = vsub.f32 %v194_v36, %v220_v9 }
 0x297   :  { %v250_v11 = vmul.f32 1.442695, %v242_v10 }
 0x299   :  { %1543 = vpow2.f32 %v250_v11 }
 0x29c   :  { %v223_v12 = vpop.xlane.xlu0 %222 }
 0x29d   :  { %v243_v13 = vsub.f32 %v197_v40, %v223_v12 }
 0x29f   :  { %v1787_v14 = vpop.eup %1543  ;;  %v252_v15 = vmul.f32 1.442695, %v243_v13 }
 0x2a0   :  { %v266_v16 = vsel %vm217_vm2, %v1787_v14, 0.0 }
 0x2a1   :  { %1545 = vpow2.f32 %v252_v15  ;;  %267 = vadd.xlane.f32.xlu2 %v266_v16 }
 0x2a4   :  { %v226_v17 = vpop.xlane.xlu1 %225 }
 0x2a5   :  { %v244_v29 = vsub.f32 %v1776_v44, %v226_v17 }
 0x2a7   :  { %v1791_v18 = vpop.eup %1545  ;;  %v254_v31 = vmul.f32 1.442695, %v244_v29 }
 0x2a8   :  { %v269_v19 = vsel %vm217_vm2, %v1791_v18, 0.0 }
 0x2a9   :  { %270 = vadd.xlane.f32.xlu0 %v269_v19 }
 0x2ac   :  { %v229_v20 = vpop.xlane.xlu1 %228 }
 0x2ad   :  { %v245_v21 = vsub.f32 %v203_v48, %v229_v20 }
 0x2af   :  { %v256_v22 = vmul.f32 1.442695, %v245_v21 }
 0x2b1   :  { %1547 = vpow2.f32 %v256_v22 }
 0x2b4   :  { %v232_v30 = vpop.xlane.xlu2 %231 }
 0x2b5   :  { %v246_v32 = vsub.f32 %v206_v52, %v232_v30 }
 0x2b7   :  { %v1795_v23 = vpop.eup %1547  ;;  %v258_v37 = vmul.f32 1.442695, %v246_v32 }
 0x2b8   :  { %v275_v24 = vsel %vm217_vm2, %v1795_v23, 0.0 }
 0x2b9   :  { %1477 = vrot.lane.b32.xlu2 %v1463_v6, %s1680_s27  ;;  %276 = vadd.xlane.f32.xlu1 %v275_v24 }
 0x2bc   :  { %v235_v25 = vpop.xlane.xlu0 %234 }
 0x2bd   :  { %1492 = vrot.lane.b32.xlu0 %v1763_v33, %s1680_s27  ;;  %v247_v35 = vsub.f32 %v209_v56, %v235_v25 }
 0x2bf   :  { %v260_v33 = vmul.f32 1.442695, %v247_v35 }
 0x2c4   :  { %v238_v38 = vpop.xlane.xlu1 %237 }
 0x2c5   :  { %v248_v40 = vsub.f32 %v212_v60, %v238_v38 }
 0x2c7   :  { %v262_v43 = vmul.f32 1.442695, %v248_v40 }
 0x2cc   :  { %v241_v26 = vpop.xlane.xlu0 %240 }
 0x2cd   :  { %v249_v27 = vsub.f32 %v215_v0, %v241_v26 }
 0x2cf   :  { %v264_v28 = vmul.f32 1.442695, %v249_v27 }
 0x2d1   :  { %1549 = vpow2.f32 %v264_v28 }
 0x2d2   :  { %1551 = vpow2.f32 %v254_v31 }
 0x2d3   :  { %1553 = vpow2.f32 %v258_v37 }
 0x2d4   :  { %1555 = vpow2.f32 %v260_v33 }
 0x2d5   :  { %1557 = vpow2.f32 %v262_v43 }
 0x2d7   :  { %v1803_v34 = vpop.eup %1549 }
 0x2d8   :  { %v287_v36 = vsel %vm217_vm2, %v1803_v34, 0.0  ;;  %v1807_v39 = vpop.eup %1551 }
 0x2d9   :  { %288 = vadd.xlane.f32.xlu1 %v287_v36  ;;  %v272_v41 = vsel %vm217_vm2, %v1807_v39, 0.0  ;;  %v1811_v42 = vpop.eup %1553 }
 0x2da   :  { %v1813_v44 = vpop.eup %1555  ;;  %v278_v45 = vsel %vm217_vm2, %v1811_v42, 0.0 }
 0x2db   :  { %v281_v46 = vsel %vm217_vm2, %v1813_v44, 0.0  ;;  %v1819_v47 = vpop.eup %1557 }
 0x2dc   :  { %v284_v48 = vsel %vm217_vm2, %v1819_v47, 0.0  ;;  %v1483_v56 = vpop.permute.xlu1 %1482 }
 0x2dd   :  { %v1484_v59 = vunpack.i.l.bf16 %v1483_v56  ;;  %v1485_v61 = vunpack.i.h.bf16 %v1483_v56 }
 0x2df   :  { %v1488_v49 = vpop.permute.xlu0 %1487 }
 0x2e0   :  { %v1489_v0 = vunpack.i.l.bf16 %v1488_v49  ;;  %v1490_v1 = vunpack.i.h.bf16 %v1488_v49 }
 0x2e2   :  { %273 = vadd.xlane.f32.xlu2 %v272_v41 }
 0x2e7   :  { %279 = vadd.xlane.f32.xlu0 %v278_v45 }
 0x2ea   :  { %282 = vadd.xlane.f32.xlu2 %v281_v46 }
 0x2f2   :  { %285 = vadd.xlane.f32.xlu2 %v284_v48 }
 0x314   :  { %v268_v50 = vpop.xlane.xlu2 %267 }
 0x315   :  { %1559 = vrcp.f32 %v268_v50  ;;  %v301_v6 = vand.u32 2147483648, %v268_v50  ;;  %vm295_vm4 = vweird.f32 %v268_v50  ;;  %v299_v9 = vand.u32 2147483647, %v268_v50 }
 0x317   :  { %v302_v12 = vor.u32 1.1754944e-38, %v301_v6  ;;  %vm300_vm6 = vcmp.eq.f32.partialorder %v299_v9, 8.507059e+37 }
 0x31b   :  { %v1560_v51 = vpop.eup %1559 }
 0x31c   :  { %v1478_v52 = vpop.permute.xlu2 %1477  ;;  %v271_v53 = vpop.xlane.xlu0 %270  ;;  %v291_v54 = vmul.f32 %v1560_v51, %v268_v50  ;;  %vm296_vm3 = vweird.f32 %v1560_v51 }
 0x31d   :  { %1561 = vrcp.f32 %v271_v53  ;;  %v1479_v55 = vunpack.i.l.bf16 %v1478_v52  ;;  %v1480_v57 = vunpack.i.h.bf16 %v1478_v52  ;;  %vm297_vm5 = vmor %vm295_vm4, %vm296_vm3  ;;  %v316_v19 = vand.u32 2147483648, %v271_v53 }
 0x31e   :  { %v292_v58 = vsub.f32 1.0, %v291_v54  ;;  %vm310_vm8 = vweird.f32 %v271_v53  ;;  %v314_v22 = vand.u32 2147483647, %v271_v53 }
 0x31f   :  { %466 = vmatpush.msra.mxu2 %v1479_v55  ;;  %v317_v25 = vor.u32 1.1754944e-38, %v316_v19 }
 0x320   :  { %v293_v62 = vmul.f32 %v1560_v51, %v292_v58  ;;  %vm315_vm10 = vcmp.eq.f32.partialorder %v314_v22, 8.507059e+37 }
 0x321   :  { %467 = vmatpush.msra.mxu2 %v1480_v57 }
 0x322   :  { %v294_v5 = vadd.f32 %v1560_v51, %v293_v62 }
 0x323   :  { %v1562_v60 = vpop.eup %1561  ;;  %468 = vmatpush.msra.mxu2 %v1484_v59 }
 0x324   :  { %v306_v63 = vmul.f32 %v1562_v60, %v271_v53  ;;  %v298_v11 = vsel %vm297_vm5, %v1560_v51, %v294_v5  ;;  %vm311_vm7 = vweird.f32 %v1562_v60 }
 0x325   :  { %469 = vmatpush.msra.mxu2 %v1485_v61  ;;  %v303_v16 = vsel %vm300_vm6, %v302_v12, %v298_v11  ;;  %vm312_vm9 = vmor %vm310_vm8, %vm311_vm7 }
 0x326   :  { %v307_v4 = vsub.f32 1.0, %v306_v63  ;;  %v304_v21 = vmul.f32 %v1787_v14, %v303_v16 }
 0x327   :  { %470 = vmatpush.msra.mxu2 %v1489_v0 }
 0x328   :  { %v308_v10 = vmul.f32 %v1562_v60, %v307_v4 }
 0x329   :  { %471 = vmatpush.msra.mxu2 %v1490_v1 }
 0x32a   :  { %v309_v17 = vadd.f32 %v1562_v60, %v308_v10 }
 0x32c   :  { %v313_v24 = vsel %vm312_vm9, %v1562_v60, %v309_v17  ;;  %v277_v28 = vpop.xlane.xlu1 %276 }
 0x32d   :  { %v318_v26 = vsel %vm315_vm10, %v317_v25, %v313_v24  ;;  %1563 = vrcp.f32 %v277_v28  ;;  %v346_v54 = vand.u32 2147483648, %v277_v28  ;;  %vm340_vm3 = vweird.f32 %v277_v28 }
 0x32e   :  { %v319_v27 = vmul.f32 %v1791_v18, %v318_v26  ;;  %v344_v57 = vand.u32 2147483647, %v277_v28 }
 0x32f   :  { %v1493_v13 = vpop.permute.xlu0 %1492  ;;  %v347_v61 = vor.u32 1.1754944e-38, %v346_v54  ;;  %v86_v54 = vld [vmem:[#allocation2 + $0x28] sm:$0xff] }
 0x330   :  { %v1494_v15 = vunpack.i.l.bf16 %v1493_v13  ;;  %v1495_v20 = vunpack.i.h.bf16 %v1493_v13  ;;  %vm345_vm5 = vcmp.eq.f32.partialorder %v344_v57, 8.507059e+37 }
 0x332   :  { %472 = vmatpush.msra.mxu2 %v1494_v15 }
 0x333   :  { %v1564_v30 = vpop.eup %1563 }
 0x334   :  { %473 = vmatpush.msra.mxu2 %v1495_v20  ;;  %v336_v31 = vmul.f32 %v1564_v30, %v277_v28  ;;  %vm341_vm15 = vweird.f32 %v1564_v30 }
 0x335   :  { %1395 = vmatmul.msk.f32.vlgmr.msra.gmra.mxu2 %vm217_vm2, %v304_v21  ;;  %vm342_vm4 = vmor %vm340_vm3, %vm341_vm15 }
 0x336   :  { %v337_v37 = vsub.f32 1.0, %v336_v31 }
 0x338   :  { %v338_v18 = vmul.f32 %v1564_v30, %v337_v37 }
 0x33a   :  { %v339_v52 = vadd.f32 %v1564_v30, %v338_v18 }
 0x33c   :  { %v343_v60 = vsel %vm342_vm4, %v1564_v30, %v339_v52  ;;  %v88_v52 = vld [vmem:[#allocation2 + $0x38] sm:$0xff] }
 0x33d   :  { %1396 = vmatmul.msk.f32.gmra.mxu2 %vm217_vm2, %v319_v27  ;;  %v348_v62 = vsel %vm345_vm5, %v347_v61, %v343_v60 }
 0x34c   :  { %v289_v63 = vpop.xlane.xlu1 %288 }
 0x34d   :  { %v406_v37 = vand.u32 2147483648, %v289_v63 }
 0x355   :  { %v274_v29 = vpop.xlane.xlu2 %273 }
 0x356   :  { %1565 = vrcp.f32 %v274_v29  ;;  %v331_v41 = vand.u32 2147483648, %v274_v29  ;;  %v329_v45 = vand.u32 2147483647, %v274_v29  ;;  %vm325_vm12 = vweird.f32 %v274_v29 }
 0x358   :  { %v332_v48 = vor.u32 1.1754944e-38, %v331_v41  ;;  %vm330_vm14 = vcmp.eq.f32.partialorder %v329_v45, 8.507059e+37 }
 0x35a   :  { %v280_v14 = vpop.xlane.xlu0 %279 }
 0x35b   :  { %1567 = vrcp.f32 %v280_v14  ;;  %v361_v5 = vand.u32 2147483648, %v280_v14  ;;  %vm355_vm7 = vweird.f32 %v280_v14  ;;  %v359_v6 = vand.u32 2147483647, %v280_v14 }
 0x35c   :  { %v1566_v32 = vpop.eup %1565 }
 0x35d   :  { %v321_v35 = vmul.f32 %v1566_v32, %v274_v29  ;;  %v1827_v36 = vpop.xlane.xlu2 %282  ;;  %vm326_vm11 = vweird.f32 %v1566_v32  ;;  %v362_v12 = vor.u32 1.1754944e-38, %v361_v5  ;;  %vm360_vm9 = vcmp.eq.f32.partialorder %v359_v6, 8.507059e+37  ;;  %v1532_v5 = vld [vmem:[#allocation2 + $0x48] ss:$0 sm:$0xff] }
 0x35e   :  { %1569 = vrcp.f32 %v1827_v36  ;;  %vm327_vm13 = vmor %vm325_vm12, %vm326_vm11  ;;  %v376_v19 = vand.u32 2147483648, %v1827_v36  ;;  %vm370_vm11 = vweird.f32 %v1827_v36  ;;  %v374_v20 = vand.u32 2147483647, %v1827_v36 }
 0x35f   :  { %v322_v33 = vsub.f32 1.0, %v321_v35 }
 0x360   :  { %v377_v25 = vor.u32 1.1754944e-38, %v376_v19 }
 0x361   :  { %v1568_v38 = vpop.eup %1567  ;;  %v323_v40 = vmul.f32 %v1566_v32, %v322_v33 }
 0x362   :  { %v351_v43 = vmul.f32 %v1568_v38, %v280_v14  ;;  %vm356_vm6 = vweird.f32 %v1568_v38 }
 0x363   :  { %v324_v46 = vadd.f32 %v1566_v32, %v323_v40  ;;  %vm357_vm8 = vmor %vm355_vm7, %vm356_vm6  ;;  %vm400_vm6 = vweird.f32 %v289_v63  ;;  %v407_v40 = vor.u32 1.1754944e-38, %v406_v37 }
 0x364   :  { %v352_v50 = vsub.f32 1.0, %v351_v43  ;;  %v1570_v53 = vpop.eup %1569 }
 0x365   :  { %v328_v49 = vsel %vm327_vm13, %v1566_v32, %v324_v46  ;;  %v1830_v51 = vpop.xlane.xlu2 %285  ;;  %v366_v59 = vmul.f32 %v1570_v53, %v1827_v36  ;;  %vm371_vm10 = vweird.f32 %v1570_v53  ;;  %vm375_vm13 = vcmp.eq.f32.partialorder %v374_v20, 8.507059e+37 }
 0x366   :  { %v333_v55 = vsel %vm330_vm14, %v332_v48, %v328_v49  ;;  %1571 = vrcp.f32 %v1830_v51  ;;  %v353_v58 = vmul.f32 %v1568_v38, %v352_v50  ;;  %vm372_vm12 = vmor %vm370_vm11, %vm371_vm10  ;;  %v391_v29 = vand.u32 2147483648, %v1830_v51 }
 0x367   :  { %v334_v56 = vmul.f32 %v1807_v39, %v333_v55  ;;  %v367_v0 = vsub.f32 1.0, %v366_v59  ;;  %v349_v39 = vmul.f32 %v1795_v23, %v348_v62  ;;  %1573 = vrcp.f32 %v289_v63 }
 0x368   :  { %v354_v1 = vadd.f32 %v1568_v38, %v353_v58  ;;  %vm385_vm15 = vweird.f32 %v1830_v51  ;;  %v389_v30 = vand.u32 2147483647, %v1830_v51  ;;  %v392_v32 = vor.u32 1.1754944e-38, %v391_v29 }
 0x369   :  { %1397 = vmatmul.msk.f32.gmra.mxu2 %vm217_vm2, %v334_v56  ;;  %v368_v9 = vmul.f32 %v1570_v53, %v367_v0  ;;  %vm528_vm10 = vcmask 195584  }
 0x36a   :  { %v358_v11 = vsel %vm357_vm8, %v1568_v38, %v354_v1  ;;  %vm390_vm4 = vcmp.eq.f32.partialorder %v389_v30, 8.507059e+37  ;;  %v404_v38 = vand.u32 2147483647, %v289_v63 }
 0x36b   :  { %v363_v13 = vsel %vm360_vm9, %v362_v12, %v358_v11  ;;  %v369_v16 = vadd.f32 %v1570_v53, %v368_v9  ;;  %vm525_vm9 = vcmask 130048  }
 0x36c   :  { %v1572_v4 = vpop.eup %1571  ;;  %v364_v23 = vmul.f32 %v1811_v42, %v363_v13  ;;  %vm405_vm8 = vcmp.eq.f32.partialorder %v404_v38, 8.507059e+37 }
 0x36d   :  { %v381_v10 = vmul.f32 %v1572_v4, %v1830_v51  ;;  %v1574_v17 = vpop.eup %1573  ;;  %v373_v24 = vsel %vm372_vm12, %v1570_v53, %v369_v16  ;;  %vm386_vm14 = vweird.f32 %v1572_v4  ;;  %v89_v51 = vld [vmem:[#allocation2 + $0x40] sm:$0xff]  ;;  %v87_v53 = vld [vmem:[#allocation2 + $0x30] sm:$0xff]  ;;  %v1683_v16 = vmov 32.0  }
 0x36e   :  { %v396_v21 = vmul.f32 %v1574_v17, %v289_v63  ;;  %v378_v26 = vsel %vm375_vm13, %v377_v25, %v373_v24  ;;  %vm387_vm3 = vmor %vm385_vm15, %vm386_vm14  ;;  %vm401_vm5 = vweird.f32 %v1574_v17  ;;  %550 = vmatpush.msra.mxu3 %v89_v51  ;;  %1575 = vrcp.f32 %v1683_v16 }
 0x36f   :  { %v382_v15 = vsub.f32 1.0, %v381_v10  ;;  %v379_v42 = vmul.f32 %v1813_v44, %v378_v26  ;;  %vm402_vm7 = vmor %vm400_vm6, %vm401_vm5 }
 0x370   :  { %v397_v27 = vsub.f32 1.0, %v396_v21  ;;  %551 = vmatpush.msra.mxu3 %v88_v52 }
 0x371   :  { %1398 = vmatmul.msk.f32.gmra.mxu2 %vm217_vm2, %v349_v39  ;;  %v383_v22 = vmul.f32 %v1572_v4, %v382_v15 }
 0x372   :  { %v398_v31 = vmul.f32 %v1574_v17, %v397_v27  ;;  %552 = vmatpush.msra.mxu3 %v87_v53  ;;  %v1534_v53 = vld [vmem:[#allocation2 + $0x58] ss:$0 sm:$0xff] }
 0x373   :  { %v384_v28 = vadd.f32 %v1572_v4, %v383_v22 }
 0x374   :  { %v399_v36 = vadd.f32 %v1574_v17, %v398_v31  ;;  %553 = vmatpush.msra.mxu3 %v86_v54  ;;  %v629_v31 = vld [vmem:[#allocation2 + $0x78] sm:$0xff] }
 0x375   :  { %v388_v14 = vsel %vm387_vm3, %v1572_v4, %v384_v28 }
 0x376   :  { %v393_v35 = vsel %vm390_vm4, %v392_v32, %v388_v14  ;;  %v403_v44 = vsel %vm402_vm7, %v1574_v17, %v399_v36  ;;  %v1576_v17 = vpop.eup %1575  ;;  %662 = vmatpush.msrb.mxu3 %v629_v31  ;;  %v628_v14 = vld [vmem:[#allocation2 + $0x70] sm:$0xff]  ;;  %v627_v32 = vld [vmem:[#allocation2 + $0x68] sm:$0xff] }
 0x377   :  { %v394_v33 = vmul.f32 %v1819_v47, %v393_v35  ;;  %v408_v41 = vsel %vm405_vm8, %v407_v40, %v403_v44  ;;  %v572_v19 = vmul.f32 32.0, %v1576_v17  ;;  %vm576_vm11 = vweird.f32 %v1576_v17  ;;  %v626_v35 = vld [vmem:[#allocation2 + $0x60] sm:$0xff] }
 0x378   :  { %v409_v18 = vmul.f32 %v1803_v34, %v408_v41  ;;  %663 = vmatpush.msrb.mxu3 %v628_v14 }
 0x379   :  { %1399 = vmatmul.msk.f32.gmra.mxu2 %vm217_vm2, %v364_v23  ;;  %v573_v23 = vsub.f32 1.0, %v572_v19 }
 0x37a   :  { %664 = vmatpush.msrb.mxu3 %v627_v32 }
 0x37b   :  { %v574_v20 = vmul.f32 %v1576_v17, %v573_v23 }
 0x37c   :  { %665 = vmatpush.msrb.mxu3 %v626_v35 }
 0x37d   :  { %v575_v21 = vadd.f32 %v1576_v17, %v574_v20 }
 0x37f   :  { %v1871_v22 = vsel %vm576_vm11, %v1576_v17, %v575_v21 }
 0x381   :  { %1400 = vmatmul.msk.f32.gmra.mxu2 %vm217_vm2, %v379_v42 }
 0x389   :  { %1401 = vmatmul.msk.f32.gmra.mxu2 %vm217_vm2, %v394_v33 }
 0x391   :  { %1402 = vmatmul.msk.f32.gmra.mxu2 %vm217_vm2, %v409_v18 }
 0x3b8   :  { %v475_v43 = vpop.f32.mrf.mxu2 }
 0x3c0   :  { %v478_v45 = vpop.f32.mrf.mxu2 }
 0x3ec   :  { %v481_v46 = vpop.f32.mrf.mxu2 }
 0x3ed   :  { %501 = vrot.lane.b32.xlu2 %v481_v46, %s1675_s15 }
 0x3f4   :  { %v484_v48 = vpop.f32.mrf.mxu2 }
 0x3fc   :  { %v487_v49 = vpop.f32.mrf.mxu2 }
 0x3fd   :  { %509 = vrot.lane.b32.xlu0 %v487_v49, %s1681_s28 }
 0x404   :  { %v490_v47 = vpop.f32.mrf.mxu2 }
 0x405   :  { %503 = vrot.lane.b32.xlu0 %v484_v48, %s1675_s15  ;;  %511 = vrot.lane.b32.xlu2 %v490_v47, %s1681_s28 }
 0x40c   :  { %v493_v50 = vpop.f32.mrf.mxu2 }
 0x40d   :  { %517 = vrot.lane.b32.xlu1 %v493_v50, %s1682_s29  ;;  %v1533_v50 = vld [vmem:[#allocation2 + $0x50] ss:$0 sm:$0xff] }
 0x414   :  { %v496_v34 = vpop.f32.mrf.mxu2 }
 0x415   :  { %519 = vrot.lane.b32.xlu1 %v496_v34, %s1682_s29 }
 0x447   :  { %v502_v56 = vpop.permute.xlu2 %501 }
 0x448   :  { %v523_v57 = vsel %vm143_vm1, %v475_v43, %v502_v56 }
 0x45f   :  { %v512_v63 = vpop.permute.xlu2 %511 }
 0x46f   :  { %v510_v55 = vpop.permute.xlu0 %509 }
 0x470   :  { %v526_v58 = vsel %vm525_vm9, %v523_v57, %v510_v55 }
 0x477   :  { %v504_v61 = vpop.permute.xlu0 %503 }
 0x478   :  { %v524_v62 = vsel %vm143_vm1, %v478_v45, %v504_v61 }
 0x479   :  { %v527_v1 = vsel %vm525_vm9, %v524_v62, %v512_v63 }
 0x47f   :  { %v518_v59 = vpop.permute.xlu1 %517 }
 0x480   :  { %v529_v60 = vsel %vm528_vm10, %v526_v58, %v518_v59 }
 0x481   :  { %1403 = vmatmul.msk.f32.vlgmr.msra.gmra.mxu3 %vm44_vm0, %v529_v60 }
 0x487   :  { %v520_v0 = vpop.permute.xlu1 %519 }
 0x488   :  { %v530_v4 = vsel %vm528_vm10, %v527_v1, %v520_v0  ;;  %v32_v1 = vld [vmem:[%s2072_s0 + $0x20] sm:$0xff] }
 0x489   :  { %1404 = vmatmul.msk.f32.gmra.mxu3 %vm44_vm0, %v530_v4 }
 0x504   :  { %v555_v39 = vpop.f32.mrf.mxu3 }
 0x505   :  { %v556_v6 = vadd.f32 %v1532_v5, %v555_v39 }
 0x507   :  { %v561_v9 = vadd.f32 %v556_v6, %v1709_v2 }
 0x509   :  { %v565_v10 = vsel %vm44_vm0, %v561_v9, 0.0 }
 0x50a   :  { %566 = vadd.xlane.f32.xlu0 %v565_v10  ;;  %v1535_v10 = vld [vmem:[#allocation2 + $0x80] ss:$0 sm:$0xff] }
 0x50c   :  { %v558_v11 = vpop.f32.mrf.mxu3 }
 0x50d   :  { %v559_v12 = vadd.f32 %v1532_v5, %v558_v11  ;;  %v33_v5 = vld [vmem:[%s2072_s0 + $0x28] sm:$0xff] }
 0x50f   :  { %v562_v13 = vadd.f32 %v559_v12, %v1722_v7 }
 0x511   :  { %v568_v15 = vsel %vm44_vm0, %v562_v13, 0.0 }
 0x512   :  { %569 = vadd.xlane.f32.xlu2 %v568_v15 }
 0x57d   :  { %v567_v2 = vpop.xlane.xlu0 %566 }
 0x57e   :  { %v578_v24 = vmul.f32 %v1871_v22, %v567_v2 }
 0x580   :  { %v580_v25 = vsub.f32 %v561_v9, %v578_v24 }
 0x582   :  { %v582_v26 = vmul.f32 %v580_v25, %v580_v25 }
 0x584   :  { %v584_v7 = vsel %vm44_vm0, %v582_v26, 0.0 }
 0x585   :  { %585 = vadd.xlane.f32.xlu1 %v584_v7  ;;  %v570_v27 = vpop.xlane.xlu2 %569 }
 0x586   :  { %v579_v28 = vmul.f32 %v1871_v22, %v570_v27 }
 0x588   :  { %v581_v29 = vsub.f32 %v562_v13, %v579_v28 }
 0x58a   :  { %v583_v42 = vmul.f32 %v581_v29, %v581_v29 }
 0x58c   :  { %v587_v30 = vsel %vm44_vm0, %v583_v42, 0.0 }
 0x58d   :  { %588 = vadd.xlane.f32.xlu0 %v587_v30 }
 0x5f8   :  { %v586_v36 = vpop.xlane.xlu1 %585 }
 0x5f9   :  { %v590_v37 = vmul.f32 %v586_v36, %v1871_v22 }
 0x5fb   :  { %v592_v33 = vadd.f32 1e-05, %v590_v37 }
 0x5fd   :  { %1577 = vrsqrt.f32 %v592_v33  ;;  %vm600_vm13 = vweird.f32 %v592_v33 }
 0x600   :  { %v589_v38 = vpop.xlane.xlu0 %588 }
 0x601   :  { %v591_v44 = vmul.f32 %v589_v38, %v1871_v22 }
 0x603   :  { %v1578_v40 = vpop.eup %1577  ;;  %v593_v41 = vadd.f32 1e-05, %v591_v44 }
 0x604   :  { %v595_v18 = vmul.f32 %v1578_v40, %v592_v33  ;;  %vm601_vm12 = vweird.f32 %v1578_v40 }
 0x605   :  { %1579 = vrsqrt.f32 %v593_v41  ;;  %vm602_vm14 = vmor %vm600_vm13, %vm601_vm12  ;;  %vm610_vm3 = vweird.f32 %v593_v41 }
 0x606   :  { %v596_v43 = vmul.f32 %v1578_v40, %v595_v18 }
 0x608   :  { %v597_v45 = vmul.f32 0.5, %v596_v43 }
 0x60a   :  { %v598_v46 = vsub.f32 1.5, %v597_v45  ;;  %v692_v45 = vld [vmem:[#allocation2 + $0x190] sm:$0xff] }
 0x60b   :  { %v1580_v48 = vpop.eup %1579 }
 0x60c   :  { %v599_v49 = vmul.f32 %v1578_v40, %v598_v46  ;;  %v605_v47 = vmul.f32 %v1580_v48, %v593_v41  ;;  %vm611_vm15 = vweird.f32 %v1580_v48 }
 0x60d   :  { %vm612_vm4 = vmor %vm610_vm3, %vm611_vm15 }
 0x60e   :  { %v603_v34 = vsel %vm602_vm14, %v1578_v40, %v599_v49  ;;  %v606_v51 = vmul.f32 %v1580_v48, %v605_v47  ;;  %v693_v47 = vld [vmem:[#allocation2 + $0x198] sm:$0xff] }
 0x60f   :  { %v614_v52 = vmul.f32 %v603_v34, %v580_v25 }
 0x610   :  { %v607_v54 = vmul.f32 0.5, %v606_v51 }
 0x611   :  { %v617_v55 = vmul.f32 %v1533_v50, %v614_v52  ;;  %v694_v52 = vld [vmem:[#allocation2 + $0x1a0] sm:$0xff] }
 0x612   :  { %v608_v56 = vsub.f32 1.5, %v607_v54 }
 0x613   :  { %v1879_v57 = vadd.f32 %v1534_v53, %v617_v55 }
 0x614   :  { %v609_v58 = vmul.f32 %v1580_v48, %v608_v56  ;;  %v695_v56 = vld [vmem:[#allocation2 + $0x1a8] sm:$0xff] }
 0x615   :  { %v622_v59 = vadd.f32 %v1879_v57, %v1714_v3  ;;  %v34_v3 = vld [vmem:[%s2072_s0 + $0x30] sm:$0xff] }
 0x616   :  { %v613_v60 = vsel %vm612_vm4, %v1580_v48, %v609_v58  ;;  %v624_v4 = vadd.f32 %v34_v3, %v32_v1 }
 0x617   :  { %v615_v61 = vmul.f32 %v613_v60, %v581_v29  ;;  %1405 = vmatmul.msk.f32.vlgmr.msrb.gmra.mxu3 %vm44_vm0, %v622_v59 }
 0x619   :  { %v618_v62 = vmul.f32 %v1533_v50, %v615_v61  ;;  %v696_v61 = vld [vmem:[#allocation2 + $0x1b0] sm:$0xff] }
 0x61b   :  { %v1884_v63 = vadd.f32 %v1534_v53, %v618_v62 }
 0x61d   :  { %v623_v0 = vadd.f32 %v1884_v63, %v1727_v8  ;;  %v35_v8 = vld [vmem:[%s2072_s0 + $0x38] sm:$0xff]  ;;  %s1684_s0 = smov [#allocation5]  }
 0x61e   :  { %v625_v39 = vadd.f32 %v35_v8, %v33_v5  ;;  %s1360_s10 = sshll.u32 %s1684_s0, 4  ;;  %s1361_s10 = int_to_ptr.vmem [resolvable:$true] %s1360_s10 }
 0x61f   :  { %1406 = vmatmul.msk.f32.gmra.mxu3 %vm44_vm0, %v623_v0 }
 0x627   :  { %1407 = vmatmul.msk.f32.gmra.mxu3 %vm44_vm0, %v624_v4  ;;  %v697_v4 = vld [vmem:[#allocation2 + $0x1b8] sm:$0xff] }
 0x62f   :  { %1408 = vmatmul.msk.f32.gmra.mxu3 %vm44_vm0, %v625_v39 }
 0x637   :  { %1409 = vmatmul.msk.f32.gmra.mxu3 %vm44_vm0, %v32_v1 }
 0x63f   :  { %1410 = vmatmul.msk.f32.gmra.mxu3 %vm44_vm0, %v33_v5 }
 0x69a   :  { %v667_v6 = vpop.f32.mrf.mxu3 }
 0x69b   :  { %v668_v21 = vadd.f32 %v1535_v10, %v667_v6 }
 0x6a2   :  { %v670_v9 = vpop.f32.mrf.mxu3 }
 0x6a3   :  { %v671_v23 = vadd.f32 %v1535_v10, %v670_v9 }
 0x6aa   :  { %v673_v11 = vpop.f32.mrf.mxu3 }
 0x6ab   :  { %v674_v12 = vadd.f32 %v1535_v10, %v673_v11 }
 0x6ad   :  { %722 = vrot.lane.b32.xlu1 %v674_v12, %s1678_s25 }
 0x6b2   :  { %v676_v13 = vpop.f32.mrf.mxu3 }
 0x6b3   :  { %v677_v15 = vadd.f32 %v1535_v10, %v676_v13 }
 0x6b5   :  { %720 = vrot.lane.b32.xlu0 %v677_v15, %s1677_s24  ;;  %724 = vrot.lane.b32.xlu2 %v677_v15, %s1678_s25 }
 0x6b6   :  { %714 = vrot.lane.b32.xlu1 %v674_v12, %s1676_s23 }
 0x6ba   :  { %v679_v32 = vpop.f32.mrf.mxu3 }
 0x6bb   :  { %v680_v36 = vadd.f32 %v1535_v10, %v679_v32 }
 0x6bd   :  { %716 = vrot.lane.b32.xlu0 %v677_v15, %s1676_s23  ;;  %718 = vrot.lane.b32.xlu2 %v674_v12, %s1677_s24 }
 0x6c2   :  { %v682_v37 = vpop.f32.mrf.mxu3 }
 0x6c3   :  { %v683_v33 = vadd.f32 %v1535_v10, %v682_v37 }
 0x6c5   :  { %v1938_v38 = vpack.i.bf16 %v680_v36, %v683_v33 }
 0x70f   :  { %v725_v16 = vpop.permute.xlu2 %724 }
 0x710   :  { %754 = vrot.lane.b32.xlu2 %v725_v16, %s1679_s26 }
 0x717   :  { %v719_v17 = vpop.permute.xlu2 %718 }
 0x718   :  { %748 = vrot.lane.b32.xlu2 %v719_v17, %s1679_s26 }
 0x71f   :  { %v723_v19 = vpop.permute.xlu1 %722 }
 0x720   :  { %742 = vrot.lane.b32.xlu2 %v677_v15, %s1679_s26  ;;  %752 = vrot.lane.b32.xlu0 %v723_v19, %s1679_s26 }
 0x727   :  { %v721_v20 = vpop.permute.xlu0 %720 }
 0x728   :  { %750 = vrot.lane.b32.xlu1 %v721_v20, %s1679_s26  ;;  %702 = vrot.lane.b32.xlu2 %v671_v23, %s1676_s23  ;;  %v715_v2 = vpop.permute.xlu1 %714 }
 0x72f   :  { %v717_v24 = vpop.permute.xlu0 %716 }
 0x730   :  { %746 = vrot.lane.b32.xlu0 %v717_v24, %s1679_s26  ;;  %744 = vrot.lane.b32.xlu1 %v715_v2, %s1679_s26 }
 0x731   :  { %708 = vrot.lane.b32.xlu2 %v668_v21, %s1678_s25 }
 0x738   :  { %740 = vrot.lane.b32.xlu0 %v674_v12, %s1679_s26  ;;  %700 = vrot.lane.b32.xlu1 %v668_v21, %s1676_s23 }
 0x739   :  { %1497 = vrot.lane.b32.xlu2 %v1938_v38, %s1678_s25 }
 0x740   :  { %704 = vrot.lane.b32.xlu0 %v668_v21, %s1677_s24  ;;  %706 = vrot.lane.b32.xlu1 %v671_v23, %s1677_s24 }
 0x748   :  { %710 = vrot.lane.b32.xlu0 %v671_v23, %s1678_s25  ;;  %1502 = vrot.lane.b32.xlu1 %v1938_v38, %s1677_s24 }
 0x750   :  { %1507 = vrot.lane.b32.xlu0 %v1938_v38, %s1676_s23 }
 0x76a   :  { %v755_v25 = vpop.permute.xlu2 %754 }
 0x76b   :  { %1411 = vmatpush.xpose.msk.msrb.mxu0 %vm143_vm1, %v755_v25 }
 0x772   :  { %v749_v27 = vpop.permute.xlu2 %748 }
 0x77a   :  { %v743_v42 = vpop.permute.xlu2 %742 }
 0x782   :  { %v703_v14 = vpop.permute.xlu2 %702 }
 0x78b   :  { %v709_v40 = vpop.permute.xlu2 %708 }
 0x792   :  { %v753_v26 = vpop.permute.xlu0 %752 }
 0x793   :  { %1412 = vmatpush.xpose.msk.msrb.mxu0 %vm143_vm1, %v753_v26  ;;  %v1498_v6 = vpop.permute.xlu2 %1497 }
 0x79a   :  { %v751_v7 = vpop.permute.xlu1 %750 }
 0x79b   :  { %1413 = vmatpush.xpose.msk.msrb.mxu0 %vm143_vm1, %v751_v7  ;;  %v691_v7 = vld [vmem:[#allocation2 + $0x188] sm:$0xff] }
 0x79f   :  { %1414 = vmatpush.xpose.msk.msrb.mxu0 %vm143_vm1, %v749_v27 }
 0x7a2   :  { %v747_v28 = vpop.permute.xlu0 %746  ;;  %v745_v29 = vpop.permute.xlu1 %744 }
 0x7a3   :  { %1415 = vmatpush.xpose.msk.msrb.mxu0 %vm143_vm1, %v747_v28 }
 0x7a7   :  { %1416 = vmatpush.xpose.msk.msrb.mxu0 %vm143_vm1, %v745_v29 }
 0x7aa   :  { %v741_v30 = vpop.permute.xlu0 %740  ;;  %v701_v31 = vpop.permute.xlu1 %700 }
 0x7ab   :  { %1417 = vmatpush.xpose.msk.msrb.mxu0 %vm143_vm1, %v743_v42 }
 0x7af   :  { %1418 = vmatpush.xpose.msk.msrb.mxu0 %vm143_vm1, %v741_v30 }
 0x7b2   :  { %1419 = vmatmul.msk.f32.vlgmr.msrb.gmra.mxu0 %vm143_vm1, %v668_v21  ;;  %v705_v35 = vpop.permute.xlu0 %704  ;;  %v707_v44 = vpop.permute.xlu1 %706 }
 0x7ba   :  { %1420 = vmatmul.msk.f32.gmra.mxu0 %vm143_vm1, %v671_v23  ;;  %v711_v41 = vpop.permute.xlu0 %710  ;;  %v1503_v3 = vpop.permute.xlu1 %1502 }
 0x7c2   :  { %1421 = vmatmul.msk.f32.gmra.mxu0 %vm143_vm1, %v701_v31  ;;  %v1508_v12 = vpop.permute.xlu0 %1507 }
 0x7ca   :  { %1422 = vmatmul.msk.f32.gmra.mxu0 %vm143_vm1, %v703_v14 }
 0x7d2   :  { %1423 = vmatmul.msk.f32.gmra.mxu0 %vm143_vm1, %v705_v35 }
 0x7da   :  { %1424 = vmatmul.msk.f32.gmra.mxu0 %vm143_vm1, %v707_v44 }
 0x7e2   :  { %1425 = vmatmul.msk.f32.gmra.mxu0 %vm143_vm1, %v709_v40 }
 0x7ea   :  { %1426 = vmatmul.msk.f32.gmra.mxu0 %vm143_vm1, %v711_v41 }
 0x82f   :  { %v1949_v18 = vpop.f32.mrf.mxu0 }
 0x837   :  { %v808_v43 = vpop.f32.mrf.mxu0 }
 0x838   :  { %v809_v27 = vadd.f32 %v808_v43, %v691_v7 }
 0x83a   :  { %v832_v31 = vsel %vm217_vm2, %v809_v27, -inf }
 0x83f   :  { %v811_v46 = vpop.f32.mrf.mxu0 }
 0x840   :  { %v812_v48 = vadd.f32 %v811_v46, %v692_v45 }
 0x842   :  { %v835_v49 = vsel %vm217_vm2, %v812_v48, -inf }
 0x843   :  { %836 = vmax.xlane.f32.xlu1 %v835_v49  ;;  %v690_v49 = vld [vmem:[#allocation2 + $0x180] sm:$0xff] }
 0x847   :  { %v814_v50 = vpop.f32.mrf.mxu0 }
 0x848   :  { %v815_v34 = vadd.f32 %v814_v50, %v693_v47  ;;  %v1992_v50 = vadd.f32 %v1949_v18, %v690_v49 }
 0x84a   :  { %v838_v51 = vsel %vm217_vm2, %v815_v34, -inf }
 0x84b   :  { %839 = vmax.xlane.f32.xlu2 %v838_v51 }
 0x84f   :  { %v817_v53 = vpop.f32.mrf.mxu0 }
 0x850   :  { %v818_v54 = vadd.f32 %v817_v53, %v694_v52 }
 0x852   :  { %v841_v55 = vsel %vm217_vm2, %v818_v54, -inf }
 0x853   :  { %842 = vmax.xlane.f32.xlu0 %v841_v55 }
 0x857   :  { %v820_v58 = vpop.f32.mrf.mxu0 }
 0x858   :  { %v1954_v59 = vadd.f32 %v820_v58, %v695_v56 }
 0x85a   :  { %v844_v60 = vsel %vm217_vm2, %v1954_v59, -inf }
 0x85b   :  { %845 = vmax.xlane.f32.xlu0 %v844_v60 }
 0x85f   :  { %v823_v62 = vpop.f32.mrf.mxu0 }
 0x860   :  { %v824_v0 = vadd.f32 %v823_v62, %v696_v61 }
 0x862   :  { %v847_v1 = vsel %vm217_vm2, %v824_v0, -inf }
 0x863   :  { %848 = vmax.xlane.f32.xlu2 %v847_v1 }
 0x867   :  { %v826_v5 = vpop.f32.mrf.mxu0 }
 0x868   :  { %v1959_v8 = vadd.f32 %v826_v5, %v697_v4 }
 0x86a   :  { %v850_v39 = vsel %vm217_vm2, %v1959_v8, -inf }
 0x86b   :  { %851 = vmax.xlane.f32.xlu1 %v850_v39 }
 0x86f   :  { %1517 = vrot.lane.b32.xlu0 %v1503_v3, %s1680_s27 }
 0x87b   :  { %1512 = vrot.lane.b32.xlu2 %v1498_v6, %s1680_s27 }
 0x8b6   :  { %v837_v9 = vpop.xlane.xlu1 %836 }
 0x8b7   :  { %v855_v10 = vsub.f32 %v812_v48, %v837_v9 }
 0x8b9   :  { %v865_v11 = vmul.f32 1.442695, %v855_v10 }
 0x8bb   :  { %1581 = vpow2.f32 %v865_v11 }
 0x8be   :  { %v840_v13 = vpop.xlane.xlu2 %839 }
 0x8bf   :  { %v856_v15 = vsub.f32 %v815_v34, %v840_v13  ;;  %v829_v34 = vsel %vm217_vm2, %v1992_v50, -inf }
 0x8c1   :  { %v1965_v16 = vpop.eup %1581  ;;  %v867_v17 = vmul.f32 1.442695, %v856_v15 }
 0x8c2   :  { %v883_v19 = vsel %vm217_vm2, %v1965_v16, 0.0 }
 0x8c3   :  { %1583 = vpow2.f32 %v867_v17  ;;  %884 = vadd.xlane.f32.xlu0 %v883_v19 }
 0x8c6   :  { %v843_v23 = vpop.xlane.xlu0 %842 }
 0x8c7   :  { %v857_v20 = vsub.f32 %v818_v54, %v843_v23 }
 0x8c9   :  { %v1969_v21 = vpop.eup %1583  ;;  %v869_v2 = vmul.f32 1.442695, %v857_v20 }
 0x8ca   :  { %v886_v24 = vsel %vm217_vm2, %v1969_v21, 0.0 }
 0x8cb   :  { %1585 = vpow2.f32 %v869_v2  ;;  %887 = vadd.xlane.f32.xlu1 %v886_v24 }
 0x8ce   :  { %v846_v42 = vpop.xlane.xlu0 %845 }
 0x8cf   :  { %v858_v40 = vsub.f32 %v1954_v59, %v846_v42 }
 0x8d1   :  { %v1973_v25 = vpop.eup %1585  ;;  %v871_v41 = vmul.f32 1.442695, %v858_v40 }
 0x8d2   :  { %v889_v26 = vsel %vm217_vm2, %v1973_v25, 0.0 }
 0x8d3   :  { %890 = vadd.xlane.f32.xlu2 %v889_v26 }
 0x8d6   :  { %v849_v28 = vpop.xlane.xlu2 %848 }
 0x8d7   :  { %v859_v29 = vsub.f32 %v824_v0, %v849_v28  ;;  %1527 = vrot.lane.b32.xlu0 %v1938_v38, %s1680_s27 }
 0x8d9   :  { %v873_v30 = vmul.f32 1.442695, %v859_v29 }
 0x8db   :  { %1587 = vpow2.f32 %v873_v30  ;;  %833 = vmax.xlane.f32.xlu2 %v832_v31 }
 0x8dc   :  { %1589 = vpow2.f32 %v871_v41 }
 0x8de   :  { %v1513_v14 = vpop.permute.xlu2 %1512  ;;  %v852_v46 = vpop.xlane.xlu1 %851 }
 0x8df   :  { %v1514_v32 = vunpack.i.l.bf16 %v1513_v14  ;;  %v1515_v36 = vunpack.i.h.bf16 %v1513_v14  ;;  %v860_v48 = vsub.f32 %v1959_v8, %v852_v46 }
 0x8e1   :  { %v1980_v35 = vpop.eup %1587  ;;  %1077 = vmatpush.msra.mxu0 %v1514_v32  ;;  %1441 = vmatpush.msra.mxu3 %v1514_v32  ;;  %v1518_v37 = vpop.permute.xlu0 %1517  ;;  %v875_v47 = vmul.f32 1.442695, %v860_v48 }
 0x8e2   :  { %v895_v33 = vsel %vm217_vm2, %v1980_v35, 0.0  ;;  %v1519_v44 = vunpack.i.l.bf16 %v1518_v37  ;;  %v1520_v38 = vunpack.i.h.bf16 %v1518_v37  ;;  %v1986_v43 = vpop.eup %1589 }
 0x8e3   :  { %1078 = vmatpush.msra.mxu0 %v1515_v36  ;;  %1442 = vmatpush.msra.mxu3 %v1515_v36  ;;  %v892_v45 = vsel %vm217_vm2, %v1986_v43, 0.0  ;;  %1591 = vpow2.f32 %v875_v47 }
 0x8e4   :  { %896 = vadd.xlane.f32.xlu2 %v895_v33  ;;  %1522 = vrot.lane.b32.xlu1 %v1508_v12, %s1680_s27 }
 0x8e5   :  { %1079 = vmatpush.msra.mxu0 %v1519_v44  ;;  %1443 = vmatpush.msra.mxu3 %v1519_v44 }
 0x8e7   :  { %1080 = vmatpush.msra.mxu0 %v1520_v38  ;;  %1444 = vmatpush.msra.mxu3 %v1520_v38 }
 0x8e9   :  { %v1996_v51 = vpop.eup %1591 }
 0x8ea   :  { %v898_v52 = vsel %vm217_vm2, %v1996_v51, 0.0 }
 0x901   :  { %893 = vadd.xlane.f32.xlu0 %v892_v45 }
 0x90e   :  { %830 = vmax.xlane.f32.xlu1 %v829_v34 }
 0x916   :  { %899 = vadd.xlane.f32.xlu1 %v898_v52 }
 0x936   :  { %v885_v53 = vpop.xlane.xlu0 %884 }
 0x937   :  { %1593 = vrcp.f32 %v885_v53  ;;  %v942_v8 = vand.u32 2147483648, %v885_v53  ;;  %vm936_vm6 = vweird.f32 %v885_v53  ;;  %v940_v39 = vand.u32 2147483647, %v885_v53 }
 0x939   :  { %v943_v17 = vor.u32 1.1754944e-38, %v942_v8  ;;  %vm941_vm8 = vcmp.eq.f32.partialorder %v940_v39, 8.507059e+37 }
 0x93d   :  { %v1594_v55 = vpop.eup %1593 }
 0x93e   :  { %v888_v54 = vpop.xlane.xlu1 %887  ;;  %v932_v18 = vmul.f32 %v1594_v55, %v885_v53  ;;  %vm937_vm5 = vweird.f32 %v1594_v55 }
 0x93f   :  { %1595 = vrcp.f32 %v888_v54  ;;  %vm938_vm7 = vmor %vm936_vm6, %vm937_vm5  ;;  %v957_v7 = vand.u32 2147483648, %v888_v54  ;;  %vm951_vm12 = vweird.f32 %v888_v54  ;;  %v955_v29 = vand.u32 2147483647, %v888_v54 }
 0x940   :  { %v933_v58 = vsub.f32 1.0, %v932_v18 }
 0x941   :  { %v958_v31 = vor.u32 1.1754944e-38, %v957_v7  ;;  %vm956_vm14 = vcmp.eq.f32.partialorder %v955_v29, 8.507059e+37 }
 0x942   :  { %v934_v62 = vmul.f32 %v1594_v55, %v933_v58 }
 0x944   :  { %v935_v3 = vadd.f32 %v1594_v55, %v934_v62 }
 0x945   :  { %v1596_v59 = vpop.eup %1595 }
 0x946   :  { %v2000_v56 = vpop.xlane.xlu2 %890  ;;  %v947_v0 = vmul.f32 %v1596_v59, %v888_v54  ;;  %v939_v10 = vsel %vm938_vm7, %v1594_v55, %v935_v3  ;;  %vm952_vm11 = vweird.f32 %v1596_v59 }
 0x947   :  { %1597 = vrcp.f32 %v2000_v56  ;;  %v944_v20 = vsel %vm941_vm8, %v943_v17, %v939_v10  ;;  %vm953_vm13 = vmor %vm951_vm12, %vm952_vm11  ;;  %v972_v36 = vand.u32 2147483648, %v2000_v56  ;;  %vm966_vm3 = vweird.f32 %v2000_v56 }
 0x948   :  { %v948_v4 = vsub.f32 1.0, %v947_v0  ;;  %v945_v28 = vmul.f32 %v1965_v16, %v944_v20  ;;  %v970_v16 = vand.u32 2147483647, %v2000_v56 }
 0x949   :  { %v1528_v13 = vpop.permute.xlu0 %1527  ;;  %v973_v44 = vor.u32 1.1754944e-38, %v972_v36 }
 0x94a   :  { %v949_v11 = vmul.f32 %v1596_v59, %v948_v4  ;;  %v1529_v2 = vunpack.i.l.bf16 %v1528_v13  ;;  %vm971_vm5 = vcmp.eq.f32.partialorder %v970_v16, 8.507059e+37 }
 0x94c   :  { %v950_v26 = vadd.f32 %v1596_v59, %v949_v11 }
 0x94d   :  { %v1598_v5 = vpop.eup %1597 }
 0x94e   :  { %v834_v60 = vpop.xlane.xlu2 %833  ;;  %v962_v12 = vmul.f32 %v1598_v5, %v2000_v56  ;;  %v954_v30 = vsel %vm953_vm13, %v1596_v59, %v950_v26  ;;  %vm967_vm15 = vweird.f32 %v1598_v5 }
 0x94f   :  { %v854_v61 = vsub.f32 %v809_v27, %v834_v60  ;;  %v1530_v27 = vunpack.i.h.bf16 %v1528_v13  ;;  %v959_v14 = vsel %vm956_vm14, %v958_v31, %v954_v30  ;;  %vm968_vm4 = vmor %vm966_vm3, %vm967_vm15 }
 0x950   :  { %v963_v24 = vsub.f32 1.0, %v962_v12  ;;  %v960_v37 = vmul.f32 %v1969_v21, %v959_v14 }
 0x951   :  { %v863_v1 = vmul.f32 1.442695, %v854_v61 }
 0x952   :  { %v964_v42 = vmul.f32 %v1598_v5, %v963_v24 }
 0x953   :  { %1599 = vpow2.f32 %v863_v1 }
 0x954   :  { %v965_v32 = vadd.f32 %v1598_v5, %v964_v42 }
 0x956   :  { %v1523_v6 = vpop.permute.xlu1 %1522  ;;  %v969_v33 = vsel %vm968_vm4, %v1598_v5, %v965_v32 }
 0x957   :  { %v1524_v9 = vunpack.i.l.bf16 %v1523_v6  ;;  %v1525_v19 = vunpack.i.h.bf16 %v1523_v6  ;;  %v974_v38 = vsel %vm971_vm5, %v973_v44, %v969_v33  ;;  %v897_v40 = vpop.xlane.xlu2 %896 }
 0x958   :  { %v975_v41 = vmul.f32 %v1973_v25, %v974_v38  ;;  %1601 = vrcp.f32 %v897_v40  ;;  %v1002_v62 = vand.u32 2147483648, %v897_v40  ;;  %vm996_vm13 = vweird.f32 %v897_v40 }
 0x959   :  { %v2004_v15 = vpop.eup %1599  ;;  %1081 = vmatpush.msra.mxu0 %v1524_v9  ;;  %1445 = vmatpush.msra.mxu3 %v1524_v9  ;;  %v1000_v3 = vand.u32 2147483647, %v897_v40 }
 0x95a   :  { %v880_v23 = vsel %vm217_vm2, %v2004_v15, 0.0 }
 0x95b   :  { %1082 = vmatpush.msra.mxu0 %v1525_v19  ;;  %1446 = vmatpush.msra.mxu3 %v1525_v19  ;;  %vm1001_vm15 = vcmp.eq.f32.partialorder %v1000_v3, 8.507059e+37 }
 0x95c   :  { %881 = vadd.xlane.f32.xlu2 %v880_v23 }
 0x95d   :  { %1083 = vmatpush.msra.mxu0 %v1529_v2  ;;  %1447 = vmatpush.msra.mxu3 %v1529_v2 }
 0x95e   :  { %v1602_v46 = vpop.eup %1601 }
 0x95f   :  { %1084 = vmatpush.msra.mxu0 %v1530_v27  ;;  %1448 = vmatpush.msra.mxu3 %v1530_v27  ;;  %v992_v48 = vmul.f32 %v1602_v46, %v897_v40  ;;  %vm997_vm11 = vweird.f32 %v1602_v46 }
 0x960   :  { %1429 = vmatmul.msk.f32.vlgmr.msra.gmra.mxu3 %vm217_vm2, %v945_v28  ;;  %vm998_vm14 = vmor %vm996_vm13, %vm997_vm11 }
 0x961   :  { %v993_v49 = vsub.f32 1.0, %v992_v48 }
 0x963   :  { %v994_v53 = vmul.f32 %v1602_v46, %v993_v49 }
 0x965   :  { %v995_v61 = vadd.f32 %v1602_v46, %v994_v53 }
 0x967   :  { %v999_v4 = vsel %vm998_vm14, %v1602_v46, %v995_v61 }
 0x968   :  { %1430 = vmatmul.msk.f32.gmra.mxu3 %vm217_vm2, %v960_v37 }
 0x970   :  { %1431 = vmatmul.msk.f32.gmra.mxu3 %vm217_vm2, %v975_v41 }
 0x974   :  { %v894_v45 = vpop.xlane.xlu0 %893 }
 0x975   :  { %1603 = vrcp.f32 %v894_v45  ;;  %v987_v52 = vand.u32 2147483648, %v894_v45  ;;  %v985_v55 = vand.u32 2147483647, %v894_v45  ;;  %vm981_vm7 = vweird.f32 %v894_v45 }
 0x977   :  { %v988_v58 = vor.u32 1.1754944e-38, %v987_v52  ;;  %vm986_vm12 = vcmp.eq.f32.partialorder %v985_v55, 8.507059e+37  ;;  %v688_v55 = vld [vmem:[#allocation2 + $0xa0] sm:$0xff] }
 0x978   :  { %1159 = vmatpush.msrb.mxu2 %v688_v55 }
 0x97b   :  { %v1604_v21 = vpop.eup %1603 }
 0x97c   :  { %v977_v47 = vmul.f32 %v1604_v21, %v894_v45  ;;  %vm982_vm6 = vweird.f32 %v1604_v21 }
 0x97d   :  { %vm983_vm8 = vmor %vm981_vm7, %vm982_vm6 }
 0x97e   :  { %v978_v34 = vsub.f32 1.0, %v977_v47 }
 0x980   :  { %v979_v54 = vmul.f32 %v1604_v21, %v978_v34 }
 0x981   :  { %v831_v56 = vpop.xlane.xlu1 %830 }
 0x982   :  { %v853_v25 = vsub.f32 %v1992_v50, %v831_v56  ;;  %v980_v18 = vadd.f32 %v1604_v21, %v979_v54  ;;  %v1003_v50 = vor.u32 1.1754944e-38, %v1002_v62  ;;  %v687_v56 = vld [vmem:[#allocation2 + $0x98] sm:$0xff] }
 0x983   :  { %1160 = vmatpush.msrb.mxu2 %v687_v56  ;;  %v1538_v56 = vld [vmem:[#allocation2 + $0xb8] ss:$0 sm:$0xff] }
 0x984   :  { %v861_v59 = vmul.f32 1.442695, %v853_v25  ;;  %v984_v60 = vsel %vm983_vm8, %v1604_v21, %v980_v18  ;;  %v1004_v8 = vsel %vm1001_vm15, %v1003_v50, %v999_v4  ;;  %v686_v25 = vld [vmem:[#allocation2 + $0x90] sm:$0xff]  ;;  %v685_v18 = vld [vmem:[#allocation2 + $0x88] sm:$0xff] }
 0x985   :  { %v989_v0 = vsel %vm986_vm12, %v988_v58, %v984_v60  ;;  %v1005_v9 = vmul.f32 %v1980_v35, %v1004_v8  ;;  %1161 = vmatpush.msrb.mxu2 %v686_v25 }
 0x986   :  { %1605 = vpow2.f32 %v861_v59  ;;  %v990_v1 = vmul.f32 %v1986_v43, %v989_v0 }
 0x987   :  { %1162 = vmatpush.msrb.mxu2 %v685_v18 }
 0x988   :  { %1432 = vmatmul.msk.f32.gmra.mxu3 %vm217_vm2, %v990_v1 }
 0x989   :  { %v900_v5 = vpop.xlane.xlu1 %899 }
 0x98a   :  { %1607 = vrcp.f32 %v900_v5  ;;  %v1017_v12 = vand.u32 2147483648, %v900_v5  ;;  %v1015_v17 = vand.u32 2147483647, %v900_v5  ;;  %vm1011_vm4 = vweird.f32 %v900_v5 }
 0x98c   :  { %v1606_v39 = vpop.eup %1605  ;;  %v1018_v23 = vor.u32 1.1754944e-38, %v1017_v12  ;;  %vm1016_vm6 = vcmp.eq.f32.partialorder %v1015_v17, 8.507059e+37 }
 0x98d   :  { %v877_v6 = vsel %vm217_vm2, %v1606_v39, 0.0 }
 0x98e   :  { %878 = vadd.xlane.f32.xlu0 %v877_v6  ;;  %v1536_v6 = vld [vmem:[#allocation2 + $0xa8] ss:$0 sm:$0xff] }
 0x990   :  { %v1608_v10 = vpop.eup %1607  ;;  %1433 = vmatmul.msk.f32.gmra.mxu3 %vm217_vm2, %v1005_v9 }
 0x991   :  { %v1007_v43 = vmul.f32 %v1608_v10, %v900_v5  ;;  %vm1012_vm3 = vweird.f32 %v1608_v10 }
 0x992   :  { %vm1013_vm5 = vmor %vm1011_vm4, %vm1012_vm3 }
 0x993   :  { %v1008_v11 = vsub.f32 1.0, %v1007_v43 }
 0x995   :  { %v1009_v13 = vmul.f32 %v1608_v10, %v1008_v11 }
 0x997   :  { %v1010_v19 = vadd.f32 %v1608_v10, %v1009_v13 }
 0x999   :  { %v1014_v20 = vsel %vm1013_vm5, %v1608_v10, %v1010_v19 }
 0x99a   :  { %v1019_v2 = vsel %vm1016_vm6, %v1018_v23, %v1014_v20  ;;  %v1227_v23 = vld [vmem:[#allocation2 + $0xd8] sm:$0xff]  ;;  %v1226_v20 = vld [vmem:[#allocation2 + $0xd0] sm:$0xff] }
 0x99b   :  { %v1020_v24 = vmul.f32 %v1996_v51, %v1019_v2  ;;  %1248 = vmatpush.msrb.mxu1 %v1227_v23  ;;  %v1225_v2 = vld [vmem:[#allocation2 + $0xc8] sm:$0xff] }
 0x99d   :  { %1434 = vmatmul.msk.f32.gmra.mxu3 %vm217_vm2, %v1020_v24  ;;  %1249 = vmatpush.msrb.mxu1 %v1226_v20 }
 0x99f   :  { %1250 = vmatpush.msrb.mxu1 %v1225_v2 }
 0x9cf   :  { %v882_v27 = vpop.xlane.xlu2 %881 }
 0x9d0   :  { %1609 = vrcp.f32 %v882_v27  ;;  %v927_v45 = vand.u32 2147483648, %v882_v27  ;;  %vm921_vm14 = vweird.f32 %v882_v27  ;;  %v925_v49 = vand.u32 2147483647, %v882_v27 }
 0x9d2   :  { %v928_v34 = vor.u32 1.1754944e-38, %v927_v45  ;;  %vm926_vm3 = vcmp.eq.f32.partialorder %v925_v49, 8.507059e+37 }
 0x9d6   :  { %v1610_v29 = vpop.eup %1609 }
 0x9d7   :  { %v917_v42 = vmul.f32 %v1610_v29, %v882_v27  ;;  %vm922_vm13 = vweird.f32 %v1610_v29 }
 0x9d8   :  { %vm923_vm15 = vmor %vm921_vm14, %vm922_vm13 }
 0x9d9   :  { %v918_v31 = vsub.f32 1.0, %v917_v42 }
 0x9db   :  { %v919_v37 = vmul.f32 %v1610_v29, %v918_v31 }
 0x9dd   :  { %v920_v41 = vadd.f32 %v1610_v29, %v919_v37  ;;  %v1266_v37 = vld [vmem:[#allocation2 + $0x110] sm:$0xff] }
 0x9df   :  { %v924_v47 = vsel %vm923_vm15, %v1610_v29, %v920_v41  ;;  %v1264_v41 = vld [vmem:[#allocation2 + $0x100] sm:$0xff] }
 0x9e0   :  { %v929_v52 = vsel %vm926_vm3, %v928_v34, %v924_v47 }
 0x9e1   :  { %v930_v53 = vmul.f32 %v2004_v15, %v929_v52  ;;  %v1537_v52 = vld [vmem:[#allocation2 + $0xb0] ss:$0 sm:$0xff] }
 0x9e3   :  { %v1092_v35 = vpop.f32.mrf.mxu3 }
 0x9e4   :  { %1112 = vrot.lane.b32.xlu1 %v1092_v35, %s1675_s15 }
 0x9eb   :  { %v1095_v26 = vpop.f32.mrf.mxu3 }
 0x9f3   :  { %v1098_v7 = vpop.f32.mrf.mxu3 }
 0x9f4   :  { %1120 = vrot.lane.b32.xlu0 %v1098_v7, %s1681_s28 }
 0x9fc   :  { %1114 = vrot.lane.b32.xlu0 %v1095_v26, %s1675_s15 }
 0xa01   :  { %v879_v28 = vpop.xlane.xlu0 %878 }
 0xa02   :  { %1611 = vrcp.f32 %v879_v28  ;;  %v912_v36 = vand.u32 2147483648, %v879_v28  ;;  %v910_v33 = vand.u32 2147483647, %v879_v28  ;;  %vm906_vm8 = vweird.f32 %v879_v28 }
 0xa04   :  { %v913_v38 = vor.u32 1.1754944e-38, %v912_v36  ;;  %vm911_vm12 = vcmp.eq.f32.partialorder %v910_v33, 8.507059e+37  ;;  %v1267_v36 = vld [vmem:[#allocation2 + $0x118] sm:$0xff] }
 0xa08   :  { %v1612_v30 = vpop.eup %1611 }
 0xa09   :  { %v902_v51 = vmul.f32 %v1612_v30, %v879_v28  ;;  %vm907_vm7 = vweird.f32 %v1612_v30 }
 0xa0a   :  { %vm908_vm11 = vmor %vm906_vm8, %vm907_vm7 }
 0xa0b   :  { %v903_v14 = vsub.f32 1.0, %v902_v51  ;;  %v1101_v32 = vpop.f32.mrf.mxu3 }
 0xa0c   :  { %1122 = vrot.lane.b32.xlu1 %v1101_v32, %s1681_s28  ;;  %v1268_v32 = vld [vmem:[#allocation2 + $0x120] sm:$0xff] }
 0xa0d   :  { %v904_v16 = vmul.f32 %v1612_v30, %v903_v14  ;;  %1285 = vmatpush.msra.mxu2 %v1268_v32 }
 0xa0f   :  { %v905_v44 = vadd.f32 %v1612_v30, %v904_v16  ;;  %1286 = vmatpush.msra.mxu2 %v1267_v36 }
 0xa11   :  { %v909_v40 = vsel %vm908_vm11, %v1612_v30, %v905_v44  ;;  %v1224_v30 = vld [vmem:[#allocation2 + $0xc0] sm:$0xff]  ;;  %v1265_v44 = vld [vmem:[#allocation2 + $0x108] sm:$0xff]  ;;  %1287 = vmatpush.msra.mxu2 %v1266_v37 }
 0xa12   :  { %v914_v46 = vsel %vm911_vm12, %v913_v38, %v909_v40  ;;  %1251 = vmatpush.msrb.mxu1 %v1224_v30 }
 0xa13   :  { %v1104_v48 = vpop.f32.mrf.mxu3  ;;  %v915_v21 = vmul.f32 %v1606_v39, %v914_v46  ;;  %1288 = vmatpush.msra.mxu2 %v1265_v44 }
 0xa14   :  { %1128 = vrot.lane.b32.xlu2 %v1104_v48, %s1682_s29 }
 0xa15   :  { %1427 = vmatmul.msk.f32.vlgmr.msra.gmra.mxu0 %vm217_vm2, %v915_v21  ;;  %1289 = vmatpush.msra.mxu2 %v1264_v41 }
 0xa1d   :  { %1428 = vmatmul.msk.f32.gmra.mxu0 %vm217_vm2, %v930_v53 }
 0xa20   :  { %v1107_v54 = vpop.f32.mrf.mxu3 }
 0xa21   :  { %1130 = vrot.lane.b32.xlu2 %v1107_v54, %s1682_s29 }
 0xa56   :  { %v1113_v59 = vpop.permute.xlu1 %1112 }
 0xa66   :  { %v1121_v58 = vpop.permute.xlu0 %1120 }
 0xa6e   :  { %v1129_v62 = vpop.permute.xlu2 %1128  ;;  %v1115_v1 = vpop.permute.xlu0 %1114 }
 0xa7b   :  { %v1131_v5 = vpop.permute.xlu2 %1130 }
 0xa7e   :  { %v1123_v4 = vpop.permute.xlu1 %1122 }
 0xa92   :  { %v1086_v60 = vpop.f32.mrf.mxu0 }
 0xa93   :  { %v1134_v61 = vsel %vm143_vm1, %v1086_v60, %v1113_v59 }
 0xa94   :  { %v1136_v15 = vsel %vm525_vm9, %v1134_v61, %v1121_v58 }
 0xa95   :  { %v1138_v0 = vsel %vm528_vm10, %v1136_v15, %v1129_v62 }
 0xa96   :  { %1435 = vmatmul.msk.f32.vlgmr.msrb.gmra.mxu2 %vm44_vm0, %v1138_v0 }
 0xa9a   :  { %v1089_v3 = vpop.f32.mrf.mxu0 }
 0xa9b   :  { %v1135_v50 = vsel %vm143_vm1, %v1089_v3, %v1115_v1  ;;  %v1263_v1 = vld [vmem:[#allocation2 + $0xf8] sm:$0xff]  ;;  %v1262_v3 = vld [vmem:[#allocation2 + $0xf0] sm:$0xff] }
 0xa9c   :  { %v1137_v8 = vsel %vm525_vm9, %v1135_v50, %v1123_v4  ;;  %1290 = vmatpush.msra.mxu2 %v1263_v1  ;;  %v1261_v4 = vld [vmem:[#allocation2 + $0xe8] sm:$0xff]  ;;  %v1539_v50 = vld [vmem:[#allocation2 + $0xe0] ss:$0 sm:$0xff] }
 0xa9d   :  { %v1139_v39 = vsel %vm528_vm10, %v1137_v8, %v1131_v5 }
 0xa9e   :  { %1436 = vmatmul.msk.f32.gmra.mxu2 %vm44_vm0, %v1139_v39 }
 0xa9f   :  { %1291 = vmatpush.msra.mxu2 %v1262_v3 }
 0xaa1   :  { %1292 = vmatpush.msra.mxu2 %v1261_v4 }
 0xb19   :  { %v1164_v9 = vpop.f32.mrf.mxu2 }
 0xb1a   :  { %v1165_v10 = vadd.f32 %v1536_v6, %v1164_v9 }
 0xb1c   :  { %v1170_v43 = vadd.f32 %v1165_v10, %v1879_v57 }
 0xb1e   :  { %v1174_v11 = vsel %vm44_vm0, %v1170_v43, 0.0 }
 0xb1f   :  { %1175 = vadd.xlane.f32.xlu0 %v1174_v11 }
 0xb21   :  { %v1167_v12 = vpop.f32.mrf.mxu2 }
 0xb22   :  { %v1168_v13 = vadd.f32 %v1536_v6, %v1167_v12 }
 0xb24   :  { %v1171_v17 = vadd.f32 %v1168_v13, %v1884_v63 }
 0xb26   :  { %v1177_v19 = vsel %vm44_vm0, %v1171_v17, 0.0 }
 0xb27   :  { %1178 = vadd.xlane.f32.xlu1 %v1177_v19 }
 0xb92   :  { %v1176_v24 = vpop.xlane.xlu0 %1175 }
 0xb93   :  { %v1180_v35 = vmul.f32 %v1176_v24, %v1871_v22 }
 0xb95   :  { %v1182_v57 = vsub.f32 %v1170_v43, %v1180_v35  ;;  %v1540_v43 = vld [vmem:[#allocation2 + $0x128] ss:$0 sm:$0xff] }
 0xb97   :  { %v1184_v26 = vmul.f32 %v1182_v57, %v1182_v57 }
 0xb99   :  { %v1186_v7 = vsel %vm44_vm0, %v1184_v26, 0.0 }
 0xb9a   :  { %1187 = vadd.xlane.f32.xlu2 %v1186_v7  ;;  %v1179_v27 = vpop.xlane.xlu1 %1178 }
 0xb9b   :  { %v1181_v63 = vmul.f32 %v1179_v27, %v1871_v22 }
 0xb9d   :  { %v1183_v28 = vsub.f32 %v1171_v17, %v1181_v63 }
 0xb9f   :  { %v1185_v29 = vmul.f32 %v1183_v28, %v1183_v28 }
 0xba1   :  { %v1189_v42 = vsel %vm44_vm0, %v1185_v29, 0.0 }
 0xba2   :  { %1190 = vadd.xlane.f32.xlu0 %v1189_v42 }
 0xc0d   :  { %v1188_v31 = vpop.xlane.xlu2 %1187 }
 0xc0e   :  { %v1192_v51 = vmul.f32 %v1188_v31, %v1871_v22 }
 0xc10   :  { %v1194_v14 = vadd.f32 1e-05, %v1192_v51 }
 0xc12   :  { %1613 = vrsqrt.f32 %v1194_v14  ;;  %vm1202_vm9 = vweird.f32 %v1194_v14 }
 0xc15   :  { %v1191_v16 = vpop.xlane.xlu0 %1190 }
 0xc16   :  { %v1193_v33 = vmul.f32 %v1191_v16, %v1871_v22 }
 0xc18   :  { %v1614_v38 = vpop.eup %1613  ;;  %v1195_v40 = vadd.f32 1e-05, %v1193_v33 }
 0xc19   :  { %v1197_v45 = vmul.f32 %v1614_v38, %v1194_v14  ;;  %vm1203_vm1 = vweird.f32 %v1614_v38 }
 0xc1a   :  { %1615 = vrsqrt.f32 %v1195_v40  ;;  %vm1204_vm10 = vmor %vm1202_vm9, %vm1203_vm1  ;;  %vm1212_vm5 = vweird.f32 %v1195_v40 }
 0xc1b   :  { %v1198_v46 = vmul.f32 %v1614_v38, %v1197_v45 }
 0xc1d   :  { %v1199_v48 = vmul.f32 0.5, %v1198_v46  ;;  %v1541_v46 = vld [vmem:[#allocation2 + $0x130] ss:$0 sm:$0xff] }
 0xc1f   :  { %v1200_v21 = vsub.f32 1.5, %v1199_v48 }
 0xc20   :  { %v1616_v49 = vpop.eup %1615 }
 0xc21   :  { %v1201_v47 = vmul.f32 %v1614_v38, %v1200_v21  ;;  %v1207_v34 = vmul.f32 %v1616_v49, %v1195_v40  ;;  %vm1213_vm4 = vweird.f32 %v1616_v49 }
 0xc22   :  { %vm1214_vm6 = vmor %vm1212_vm5, %vm1213_vm4 }
 0xc23   :  { %v1205_v53 = vsel %vm1204_vm10, %v1614_v38, %v1201_v47  ;;  %v1208_v54 = vmul.f32 %v1616_v49, %v1207_v34  ;;  %v1542_v47 = vld [vmem:[#allocation2 + $0x138] ss:$0 sm:$0xff] }
 0xc24   :  { %v1216_v55 = vmul.f32 %v1205_v53, %v1182_v57 }
 0xc25   :  { %v1209_v25 = vmul.f32 0.5, %v1208_v54 }
 0xc26   :  { %v1219_v18 = vmul.f32 %v1537_v52, %v1216_v55 }
 0xc27   :  { %v1210_v58 = vsub.f32 1.5, %v1209_v25 }
 0xc28   :  { %v1222_v59 = vadd.f32 %v1538_v56, %v1219_v18 }
 0xc29   :  { %v1211_v60 = vmul.f32 %v1616_v49, %v1210_v58 }
 0xc2a   :  { %1437 = vmatmul.msk.f32.vlgmr.msrb.gmra.mxu1 %vm44_vm0, %v1222_v59 }
 0xc2b   :  { %v1215_v61 = vsel %vm1214_vm6, %v1616_v49, %v1211_v60 }
 0xc2c   :  { %v1217_v62 = vmul.f32 %v1215_v61, %v1183_v28 }
 0xc2e   :  { %v1220_v15 = vmul.f32 %v1537_v52, %v1217_v62 }
 0xc30   :  { %v1223_v0 = vadd.f32 %v1538_v56, %v1220_v15 }
 0xc32   :  { %1438 = vmatmul.msk.f32.gmra.mxu1 %vm44_vm0, %v1223_v0 }
 0xca7   :  { %v1253_v5 = vpop.f32.mrf.mxu1 }
 0xca8   :  { %v1254_v8 = vadd.f32 %v1539_v50, %v1253_v5 }
 0xcaa   :  { %v1259_v39 = vmax.f32 %v1254_v8, 0.0 }
 0xcac   :  { %1439 = vmatmul.msk.f32.vlgmr.msra.gmra.mxu2 %vm217_vm2, %v1259_v39 }
 0xcaf   :  { %v1256_v6 = vpop.f32.mrf.mxu1 }
 0xcb0   :  { %v1257_v9 = vadd.f32 %v1539_v50, %v1256_v6 }
 0xcb2   :  { %v1260_v10 = vmax.f32 %v1257_v9, 0.0 }
 0xcb4   :  { %1440 = vmatmul.msk.f32.gmra.mxu2 %vm217_vm2, %v1260_v10 }
 0xd2f   :  { %v1294_v11 = vpop.f32.mrf.mxu2 }
 0xd30   :  { %v1295_v12 = vadd.f32 %v1540_v43, %v1294_v11 }
 0xd32   :  { %v1300_v13 = vadd.f32 %v1295_v12, %v1222_v59 }
 0xd34   :  { %v1304_v17 = vsel %vm44_vm0, %v1300_v13, 0.0 }
 0xd35   :  { %1305 = vadd.xlane.f32.xlu1 %v1304_v17 }
 0xd37   :  { %v1297_v19 = vpop.f32.mrf.mxu2 }
 0xd38   :  { %v1298_v23 = vadd.f32 %v1540_v43, %v1297_v19 }
 0xd3a   :  { %v1301_v20 = vadd.f32 %v1298_v23, %v1223_v0 }
 0xd3c   :  { %v1307_v2 = vsel %vm44_vm0, %v1301_v20, 0.0 }
 0xd3d   :  { %1308 = vadd.xlane.f32.xlu2 %v1307_v2 }
 0xda8   :  { %v1306_v24 = vpop.xlane.xlu1 %1305 }
 0xda9   :  { %v1310_v35 = vmul.f32 %v1306_v24, %v1871_v22 }
 0xdab   :  { %v1312_v57 = vsub.f32 %v1300_v13, %v1310_v35 }
 0xdad   :  { %v1314_v26 = vmul.f32 %v1312_v57, %v1312_v57 }
 0xdaf   :  { %v1316_v7 = vsel %vm44_vm0, %v1314_v26, 0.0 }
 0xdb0   :  { %v1309_v27 = vpop.xlane.xlu2 %1308  ;;  %1317 = vadd.xlane.f32.xlu0 %v1316_v7 }
 0xdb1   :  { %v1311_v63 = vmul.f32 %v1309_v27, %v1871_v22 }
 0xdb3   :  { %v1313_v28 = vsub.f32 %v1301_v20, %v1311_v63 }
 0xdb5   :  { %v1315_v29 = vmul.f32 %v1313_v28, %v1313_v28 }
 0xdb7   :  { %v1319_v42 = vsel %vm44_vm0, %v1315_v29, 0.0 }
 0xdb8   :  { %1320 = vadd.xlane.f32.xlu1 %v1319_v42 }
 0xe23   :  { %v1318_v30 = vpop.xlane.xlu0 %1317 }
 0xe24   :  { %v1322_v31 = vmul.f32 %v1318_v30, %v1871_v22 }
 0xe26   :  { %v1324_v51 = vadd.f32 1e-05, %v1322_v31 }
 0xe28   :  { %1617 = vrsqrt.f32 %v1324_v51  ;;  %vm1332_vm7 = vweird.f32 %v1324_v51 }
 0xe2b   :  { %v1321_v14 = vpop.xlane.xlu1 %1320 }
 0xe2c   :  { %v1323_v32 = vmul.f32 %v1321_v14, %v1871_v22 }
 0xe2e   :  { %v1618_v36 = vpop.eup %1617  ;;  %v1325_v37 = vadd.f32 1e-05, %v1323_v32 }
 0xe2f   :  { %v1327_v16 = vmul.f32 %v1618_v36, %v1324_v51  ;;  %vm1333_vm2 = vweird.f32 %v1618_v36 }
 0xe30   :  { %1619 = vrsqrt.f32 %v1325_v37  ;;  %vm1334_vm8 = vmor %vm1332_vm7, %vm1333_vm2  ;;  %vm1342_vm12 = vweird.f32 %v1325_v37 }
 0xe31   :  { %v1328_v33 = vmul.f32 %v1618_v36, %v1327_v16 }
 0xe33   :  { %v1329_v44 = vmul.f32 0.5, %v1328_v33 }
 0xe35   :  { %v1330_v38 = vsub.f32 1.5, %v1329_v44 }
 0xe36   :  { %v1620_v40 = vpop.eup %1619 }
 0xe37   :  { %v1331_v41 = vmul.f32 %v1618_v36, %v1330_v38  ;;  %v1337_v45 = vmul.f32 %v1620_v40, %v1325_v37  ;;  %vm1343_vm11 = vweird.f32 %v1620_v40 }
 0xe38   :  { %vm1344_vm13 = vmor %vm1342_vm12, %vm1343_vm11 }
 0xe39   :  { %v1335_v48 = vsel %vm1334_vm8, %v1618_v36, %v1331_v41  ;;  %v1338_v21 = vmul.f32 %v1620_v40, %v1337_v45 }
 0xe3a   :  { %v1346_v49 = vmul.f32 %v1335_v48, %v1312_v57 }
 0xe3b   :  { %v1339_v34 = vmul.f32 0.5, %v1338_v21 }
 0xe3c   :  { %v1349_v22 = vmul.f32 %v1541_v46, %v1346_v49 }
 0xe3d   :  { %v1340_v52 = vsub.f32 1.5, %v1339_v34 }
 0xe3e   :  { %v1352_v53 = vadd.f32 %v1542_v47, %v1349_v22 }
 0xe3f   :  { %v1341_v54 = vmul.f32 %v1620_v40, %v1340_v52 }
 0xe40   :  { %1354 = vst.msk [vmem:[#allocation5] sm:$0xff] %vm44_vm0, %v1352_v53 }
 0xe41   :  { %v1345_v55 = vsel %vm1344_vm13, %v1620_v40, %v1341_v54 }
 0xe42   :  { %v1347_v56 = vmul.f32 %v1345_v55, %v1313_v28 }
 0xe44   :  { %v1350_v25 = vmul.f32 %v1541_v46, %v1347_v56 }
 0xe46   :  { %v1353_v18 = vadd.f32 %v1542_v47, %v1350_v25 }
 0xe48   :  { %1355 = vst.msk [vmem:[#allocation5 + $0x8] sm:$0xff] %vm44_vm0, %v1353_v18 }
 0xe49   :  { %1368 = dma.vmem_to_hbm [thread:$0]  %s1361_s10, 256, %s1363_s13, [#allocation4], %s1674_s14, %s1674_s14, %s1675_s15  }
 0xe4a   :  { %1671 = dma.done.wait [#allocation4], 256  }
 0xe4b   :  { %1672 = vsyncadd [#allocation4], 4294967040 }
 0xe4c   :  { %1373 = vsyncpa [#allocation3], 1 }
 0xe4d   :  { %1374 = vsyncpa [#allocation4], 1 }

</bundles_post_ra>
